<compile_context>
chip_gen: v6e
topology: v6e:2x2x1
jax: 0.10.0
libtpu: 0.0.40
codegen_flags: <defaults>
</compile_context>

<pallas_src>
import numpy as np
import jax
import jax.numpy as jnp
from jax.experimental import pallas as pl
from jax.experimental.pallas import tpu as pltpu

EPS = 1e-5
NEG_SLOPE = 0.01


# ------------------------------------------------------------------ kernel ---

def _make_kernel(C, OUT, H, W, B):
    """Fused residual-block + merged avg-pool-block kernel for B packed items."""
    HW = H * W
    LTOT = B * HW
    taps = [(kh - 1, kw - 1) for kh in range(3) for kw in range(3)]  # (dy, dx)

    def kernel(x_ref, wres_ref, wmrg_ref, mask_ref, pool_ref,
               s1_ref, bc1_ref, s2_ref, bc2_ref, o_ref):
        x = x_ref[...]                                   # (C, B*HW) f32, lane-dense

        def im2col(img):
            # Stack the 9 shifted+masked taps along sublanes -> (9*C, B*HW).
            # Rolls are XLU; cross-row / cross-item wrap garbage is zeroed by the
            # precomputed boundary masks (valid for the packed layout too, since
            # every contaminated lane sits on a masked image border).
            cols = []
            for t, (dy, dx) in enumerate(taps):
                off = dy * W + dx
                if off == 0:
                    cols.append(img)
                else:
                    shifted = pltpu.roll(img, shift=(-off) % LTOT, axis=1)
                    cols.append(shifted * mask_ref[t])   # mask_ref[t]: (1, B*HW)
            return jnp.concatenate(cols, axis=0)

        def inorm_lrelu(z, s_ref, bc_ref):
            # Per-(channel, item) InstanceNorm (affine=False, biased var) over the
            # item's lane block via segment matmuls, then LeakyReLU(0.01).
            s = s_ref[...]                               # (L, 8)  entries 1/L_item
            bc = bc_ref[...]                             # (8, L)  0/1 indicator
            mean = jnp.dot(z, s, preferred_element_type=jnp.float32)
            zc = z - jnp.dot(mean, bc, preferred_element_type=jnp.float32)
            var = jnp.dot(zc * zc, s, preferred_element_type=jnp.float32)
            inv = jax.lax.rsqrt(var + EPS)
            zn = zc * jnp.dot(inv, bc, preferred_element_type=jnp.float32)
            return jnp.where(zn >= 0, zn, NEG_SLOPE * zn)

        # ---- residual block: conv3x3 (one matmul) + InstanceNorm + LReLU + skip
        res = jnp.dot(wres_ref[...], im2col(x),
                      preferred_element_type=jnp.float32)          # (C, B*HW)
        y = x + inorm_lrelu(res, s1_ref, bc1_ref)

        # ---- merged pool branches: folded conv (one matmul) ------------------
        conv = jnp.dot(wmrg_ref[...], im2col(y),
                       preferred_element_type=jnp.float32)         # (OUT, B*HW)

        # ---- AvgPool 2x2 as ONE matmul against the block-diag pooling matrix -
        pooled = jnp.dot(conv, pool_ref[...],
                         preferred_element_type=jnp.float32)       # (OUT, B*HWp)

        # ---- InstanceNorm + LeakyReLU, single lane-dense store ---------------
        o_ref[...] = inorm_lrelu(pooled, s2_ref, bc2_ref).astype(o_ref.dtype)

    return kernel


# ---------------------------------------------------------- host-side consts -

def _build_aux(B, H, W, BP):
    HW = H * W
    Hp, Wp = H // 2, W // 2
    HWp = Hp * Wp
    LTOT, LOUT = B * HW, B * HWp

    # 9 boundary-validity masks for roll-based im2col (item-local coordinates).
    ll = np.arange(LTOT) % HW
    hh, ww = ll // W, ll % W
    masks = np.zeros((9, 1, LTOT), np.float32)
    t = 0
    for dy in (-1, 0, 1):
        for dx in (-1, 0, 1):
            valid = (hh + dy >= 0) & (hh + dy < H) & (ww + dx >= 0) & (ww + dx < W)
            masks[t, 0] = valid.astype(np.float32)
            t += 1

    # Block-diagonal 2x2 average-pool matrix: four 0.25 entries per column.
    pool = np.zeros((LTOT, LOUT), np.float32)
    for b in range(B):
        for hp in range(Hp):
            for wp in range(Wp):
                col = b * HWp + hp * Wp + wp
                for dh in (0, 1):
                    for dw in (0, 1):
                        row = b * HW + (2 * hp + dh) * W + (2 * wp + dw)
                        pool[row, col] = 0.25

    # Segment-mean / broadcast-back matrices for per-item InstanceNorm (item
    # axis padded to BP>=8 for matmul alignment; padded columns are inert).
    def seg(L_item, L_total):
        s = np.zeros((L_total, BP), np.float32)
        bc = np.zeros((BP, L_total), np.float32)
        for b in range(B):
            s[b * L_item:(b + 1) * L_item, b] = 1.0 / L_item
            bc[b, b * L_item:(b + 1) * L_item] = 1.0
        return s, bc

    s1, bc1 = seg(HW, LTOT)
    s2, bc2 = seg(HWp, LOUT)
    return tuple(jnp.asarray(a) for a in (masks, pool, s1, bc1, s2, bc2))


def _pick_items_per_step(n):
    # Pack items per step to amortize per-step overhead; prefer >=2 grid steps
    # (keeps both v7x TensorCores busy) when the batch allows it.
    for b in (8, 4, 2):
        if n % b == 0 and n // b >= 2:
            return b
    for b in (8, 4, 2, 1):
        if n % b == 0:
            return b
    return 1


# ----------------------------------------------------------------- wrapper ---

def cnn_combo_pool_forward(x, params, items_per_step=None):
    N, C, H, W = x.shape
    Hp, Wp = H // 2, W // 2
    HW, HWp = H * W, Hp * Wp

    B = items_per_step if items_per_step is not None else _pick_items_per_step(N)
    assert N % B == 0
    G = N // B
    LTOT, LOUT = B * HW, B * HWp
    BP = max(8, ((B + 7) // 8) * 8)

    # Residual conv weights as a 2-D (Cout, 9*Cin) matrix, tap-major columns.
    wres = jnp.transpose(params["res1_w"], (0, 2, 3, 1)).reshape(C, 9 * C)

    # Fold the duplicated-channel concat (x1 == x2 in eval) and merge both pool
    # branches along Cout (rows 0..OUT/2-1 = cnn1, rest = cnn2).
    wf1 = params["cnn1_w"][:, :C] + params["cnn1_w"][:, C:]
    wf2 = params["cnn2_w"][:, :C] + params["cnn2_w"][:, C:]
    wm = jnp.concatenate([wf1, wf2], axis=0)              # (OUT, C, 3, 3)
    OUT = wm.shape[0]
    wmrg = jnp.transpose(wm, (0, 2, 3, 1)).reshape(OUT, 9 * C)

    # Conv biases intentionally not passed: InstanceNorm(affine=False) cancels
    # any per-channel constant (AvgPool preserves it).

    masks, pool, s1, bc1, s2, bc2 = _build_aux(B, H, W, BP)

    # Pack B items along the lane axis: (G, C, B*HW).
    x_packed = x.reshape(G, B, C, HW).transpose(0, 2, 1, 3).reshape(G, C, LTOT)

    out = pl.pallas_call(
        _make_kernel(C, OUT, H, W, B),
        out_shape=jax.ShapeDtypeStruct((G, OUT, LOUT), jnp.float32),
        grid=(G,),
        in_specs=[
            pl.BlockSpec((None, C, LTOT), lambda g: (g, 0, 0)),   # packed input
            pl.BlockSpec((C, 9 * C), lambda g: (0, 0)),           # residual W
            pl.BlockSpec((OUT, 9 * C), lambda g: (0, 0)),         # merged pool W
            pl.BlockSpec((9, 1, LTOT), lambda g: (0, 0, 0)),      # boundary masks
            pl.BlockSpec((LTOT, LOUT), lambda g: (0, 0)),         # avg-pool matrix
            pl.BlockSpec((LTOT, BP), lambda g: (0, 0)),           # seg-mean (full)
            pl.BlockSpec((BP, LTOT), lambda g: (0, 0)),           # bcast (full)
            pl.BlockSpec((LOUT, BP), lambda g: (0, 0)),           # seg-mean (pooled)
            pl.BlockSpec((BP, LOUT), lambda g: (0, 0)),           # bcast (pooled)
        ],
        out_specs=pl.BlockSpec((None, OUT, LOUT), lambda g: (g, 0, 0)),
        compiler_params=pltpu.CompilerParams(
            dimension_semantics=("parallel",)),
    )(x_packed, wres, wmrg, masks, pool, s1, bc1, s2, bc2)

    # Unpack: (G, OUT, B*HWp) -> (N, OUT, Hp, Wp).
    return (out.reshape(G, OUT, B, HWp).transpose(0, 2, 1, 3)
               .reshape(N, OUT, Hp, Wp))


# ------------------------------------------------------------------- params --

def init_params(key, in_ch, out_ch):
    ks = jax.random.split(key, 8)

    def conv_init(kw, kb, cout, cin, k):
        bound = 1.0 / np.sqrt(cin * k * k)
        w = jax.random.uniform(kw, (cout, cin, k, k), jnp.float32, -bound, bound)
        b = jax.random.uniform(kb, (cout,), jnp.float32, -bound, bound)
        return w, b

    p = {}
    p["res1_w"], p["res1_b"] = conv_init(ks[0], ks[1], in_ch, in_ch, 3)
    # rescnn2 (kernel=5) is constructed by __init__ but never used in forward.
    p["res2_w"], p["res2_b"] = conv_init(ks[2], ks[3], in_ch, in_ch, 5)
    p["cnn1_w"], p["cnn1_b"] = conv_init(ks[4], ks[5], out_ch // 2, in_ch * 2, 3)
    p["cnn2_w"], p["cnn2_b"] = conv_init(ks[6], ks[7], out_ch // 2, in_ch * 2, 3)
    return p


# ---------------------------------------------------------- pure-JAX reference

def reference_forward(x, params):
    def conv(x, w, b, pad):
        y = jax.lax.conv_general_dilated(
            x, w, (1, 1), [(pad, pad), (pad, pad)],
            dimension_numbers=("NCHW", "OIHW", "NCHW"),
            precision=jax.lax.Precision.HIGHEST)
        return y + b[None, :, None, None]

    def inorm(y):
        m = y.mean(axis=(2, 3), keepdims=True)
        v = ((y - m) ** 2).mean(axis=(2, 3), keepdims=True)
        return (y - m) / jnp.sqrt(v + EPS)

    def lrelu(y):
        return jnp.where(y >= 0, y, NEG_SLOPE * y)

    def avgpool(y):
        N, C, H, W = y.shape
        return y.reshape(N, C, H // 2, 2, W // 2, 2).mean(axis=(3, 5))

    y = x + lrelu(inorm(conv(x, params["res1_w"], params["res1_b"], 1)))
    xc = jnp.concatenate([y, y], axis=1)

    def block(xc, w, b):
        return lrelu(inorm(avgpool(conv(xc, w, b, 1))))

    z1 = block(xc, params["cnn1_w"], params["cnn1_b"])
    z2 = block(xc, params["cnn2_w"], params["cnn2_b"])
    return jnp.concatenate([z1, z2], axis=1)


# --------------------------------------------------------------------- main --

if __name__ == "__main__":
    key = jax.random.PRNGKey(0)
    kx, kp = jax.random.split(key)

    N, C, H, W = 2, 4, 16, 16       # batch, in_channels, spatial
    OUTC = 8                         # out_channels

    x = jax.random.normal(kx, (N, C, H, W), jnp.float32)
    params = init_params(kp, C, OUTC)

    out = jax.jit(cnn_combo_pool_forward)(x, params)
    out = jax.block_until_ready(out)

    assert out.shape == (N, OUTC, H // 2, W // 2), out.shape

    ref = reference_forward(x, params)
    # f32 vs f32: tightened from 2e-2 per review.
    np.testing.assert_allclose(np.asarray(out), np.asarray(ref),
                               rtol=1e-4, atol=1e-5)

    print("KERNEL_OK")
</pallas_src>

<mosaic_0001>
module attributes {stable_mosaic.version = 11 : i64} {
  func.func @kernel(%arg0: i32, %arg1: memref<1x4x512xf32, #tpu.memory_space<vmem>>, %arg2: memref<4x36xf32, #tpu.memory_space<vmem>>, %arg3: memref<8x36xf32, #tpu.memory_space<vmem>>, %arg4: memref<9x1x512xf32, #tpu.memory_space<vmem>>, %arg5: memref<512x128xf32, #tpu.memory_space<vmem>>, %arg6: memref<512x8xf32, #tpu.memory_space<vmem>>, %arg7: memref<8x512xf32, #tpu.memory_space<vmem>>, %arg8: memref<128x8xf32, #tpu.memory_space<vmem>>, %arg9: memref<8x128xf32, #tpu.memory_space<vmem>>, %arg10: memref<1x8x128xf32, #tpu.memory_space<vmem>>) attributes {dimension_semantics = [#tpu.dimension_semantics<parallel>], iteration_bounds = array<i64: 1>, scalar_prefetch = 0 : i64, scratch_operands = 0 : i64, tpu.core_type = #tpu.core_type<tc>, window_params = [{transform_indices = @transform_0, window_bounds = array<i64: 1, 4, 512>}, {pipeline_mode = #tpu.pipeline_mode<synchronous>, transform_indices = @transform_1, window_bounds = array<i64: 4, 36>}, {pipeline_mode = #tpu.pipeline_mode<synchronous>, transform_indices = @transform_2, window_bounds = array<i64: 8, 36>}, {pipeline_mode = #tpu.pipeline_mode<synchronous>, transform_indices = @transform_3, window_bounds = array<i64: 9, 1, 512>}, {pipeline_mode = #tpu.pipeline_mode<synchronous>, transform_indices = @transform_4, window_bounds = array<i64: 512, 128>}, {pipeline_mode = #tpu.pipeline_mode<synchronous>, transform_indices = @transform_5, window_bounds = array<i64: 512, 8>}, {pipeline_mode = #tpu.pipeline_mode<synchronous>, transform_indices = @transform_6, window_bounds = array<i64: 8, 512>}, {pipeline_mode = #tpu.pipeline_mode<synchronous>, transform_indices = @transform_7, window_bounds = array<i64: 128, 8>}, {pipeline_mode = #tpu.pipeline_mode<synchronous>, transform_indices = @transform_8, window_bounds = array<i64: 8, 128>}, {transform_indices = @transform_9, window_bounds = array<i64: 1, 8, 128>}]} {
    %c0 = arith.constant 0 : index
    %c0_0 = arith.constant 0 : index
    %c0_1 = arith.constant 0 : index
    %0 = vector.load %arg1[%c0, %c0_0, %c0_1] : memref<1x4x512xf32, #tpu.memory_space<vmem>>, vector<1x4x512xf32>
    %1 = vector.shape_cast %0 : vector<1x4x512xf32> to vector<4x512xf32>
    %c0_2 = arith.constant 0 : index
    %c0_3 = arith.constant 0 : index
    %2 = vector.load %arg2[%c0_2, %c0_3] : memref<4x36xf32, #tpu.memory_space<vmem>>, vector<4x36xf32>
    %c17_i32 = arith.constant 17 : i32
    %3 = tpu.dynamic_rotate %1 by %c17_i32 dim 1 : vector<4x512xf32>, i32 -> vector<4x512xf32>
    %c0_4 = arith.constant 0 : index
    %c0_5 = arith.constant 0 : index
    %c0_6 = arith.constant 0 : index
    %4 = vector.load %arg4[%c0_4, %c0_5, %c0_6] : memref<9x1x512xf32, #tpu.memory_space<vmem>>, vector<1x1x512xf32>
    %5 = vector.shape_cast %4 : vector<1x1x512xf32> to vector<1x512xf32>
    %6 = vector.broadcast %5 : vector<1x512xf32> to vector<4x512xf32>
    %7 = arith.mulf %3, %6 : vector<4x512xf32>
    %c16_i32 = arith.constant 16 : i32
    %8 = tpu.dynamic_rotate %1 by %c16_i32 dim 1 : vector<4x512xf32>, i32 -> vector<4x512xf32>
    %c1 = arith.constant 1 : index
    %c0_7 = arith.constant 0 : index
    %c0_8 = arith.constant 0 : index
    %9 = vector.load %arg4[%c1, %c0_7, %c0_8] : memref<9x1x512xf32, #tpu.memory_space<vmem>>, vector<1x1x512xf32>
    %10 = vector.shape_cast %9 : vector<1x1x512xf32> to vector<1x512xf32>
    %11 = vector.broadcast %10 : vector<1x512xf32> to vector<4x512xf32>
    %12 = arith.mulf %8, %11 : vector<4x512xf32>
    %c15_i32 = arith.constant 15 : i32
    %13 = tpu.dynamic_rotate %1 by %c15_i32 dim 1 : vector<4x512xf32>, i32 -> vector<4x512xf32>
    %c2 = arith.constant 2 : index
    %c0_9 = arith.constant 0 : index
    %c0_10 = arith.constant 0 : index
    %14 = vector.load %arg4[%c2, %c0_9, %c0_10] : memref<9x1x512xf32, #tpu.memory_space<vmem>>, vector<1x1x512xf32>
    %15 = vector.shape_cast %14 : vector<1x1x512xf32> to vector<1x512xf32>
    %16 = vector.broadcast %15 : vector<1x512xf32> to vector<4x512xf32>
    %17 = arith.mulf %13, %16 : vector<4x512xf32>
    %c1_i32 = arith.constant 1 : i32
    %18 = tpu.dynamic_rotate %1 by %c1_i32 dim 1 : vector<4x512xf32>, i32 -> vector<4x512xf32>
    %c3 = arith.constant 3 : index
    %c0_11 = arith.constant 0 : index
    %c0_12 = arith.constant 0 : index
    %19 = vector.load %arg4[%c3, %c0_11, %c0_12] : memref<9x1x512xf32, #tpu.memory_space<vmem>>, vector<1x1x512xf32>
    %20 = vector.shape_cast %19 : vector<1x1x512xf32> to vector<1x512xf32>
    %21 = vector.broadcast %20 : vector<1x512xf32> to vector<4x512xf32>
    %22 = arith.mulf %18, %21 : vector<4x512xf32>
    %c511_i32 = arith.constant 511 : i32
    %23 = tpu.dynamic_rotate %1 by %c511_i32 dim 1 : vector<4x512xf32>, i32 -> vector<4x512xf32>
    %c5 = arith.constant 5 : index
    %c0_13 = arith.constant 0 : index
    %c0_14 = arith.constant 0 : index
    %24 = vector.load %arg4[%c5, %c0_13, %c0_14] : memref<9x1x512xf32, #tpu.memory_space<vmem>>, vector<1x1x512xf32>
    %25 = vector.shape_cast %24 : vector<1x1x512xf32> to vector<1x512xf32>
    %26 = vector.broadcast %25 : vector<1x512xf32> to vector<4x512xf32>
    %27 = arith.mulf %23, %26 : vector<4x512xf32>
    %c497_i32 = arith.constant 497 : i32
    %28 = tpu.dynamic_rotate %1 by %c497_i32 dim 1 : vector<4x512xf32>, i32 -> vector<4x512xf32>
    %c6 = arith.constant 6 : index
    %c0_15 = arith.constant 0 : index
    %c0_16 = arith.constant 0 : index
    %29 = vector.load %arg4[%c6, %c0_15, %c0_16] : memref<9x1x512xf32, #tpu.memory_space<vmem>>, vector<1x1x512xf32>
    %30 = vector.shape_cast %29 : vector<1x1x512xf32> to vector<1x512xf32>
    %31 = vector.broadcast %30 : vector<1x512xf32> to vector<4x512xf32>
    %32 = arith.mulf %28, %31 : vector<4x512xf32>
    %c496_i32 = arith.constant 496 : i32
    %33 = tpu.dynamic_rotate %1 by %c496_i32 dim 1 : vector<4x512xf32>, i32 -> vector<4x512xf32>
    %c7 = arith.constant 7 : index
    %c0_17 = arith.constant 0 : index
    %c0_18 = arith.constant 0 : index
    %34 = vector.load %arg4[%c7, %c0_17, %c0_18] : memref<9x1x512xf32, #tpu.memory_space<vmem>>, vector<1x1x512xf32>
    %35 = vector.shape_cast %34 : vector<1x1x512xf32> to vector<1x512xf32>
    %36 = vector.broadcast %35 : vector<1x512xf32> to vector<4x512xf32>
    %37 = arith.mulf %33, %36 : vector<4x512xf32>
    %c495_i32 = arith.constant 495 : i32
    %38 = tpu.dynamic_rotate %1 by %c495_i32 dim 1 : vector<4x512xf32>, i32 -> vector<4x512xf32>
    %c8 = arith.constant 8 : index
    %c0_19 = arith.constant 0 : index
    %c0_20 = arith.constant 0 : index
    %39 = vector.load %arg4[%c8, %c0_19, %c0_20] : memref<9x1x512xf32, #tpu.memory_space<vmem>>, vector<1x1x512xf32>
    %40 = vector.shape_cast %39 : vector<1x1x512xf32> to vector<1x512xf32>
    %41 = vector.broadcast %40 : vector<1x512xf32> to vector<4x512xf32>
    %42 = arith.mulf %38, %41 : vector<4x512xf32>
    %43 = tpu.concatenate %7, %12, %17, %22, %1, %27, %32, %37, %42 in 0 : vector<4x512xf32>, vector<4x512xf32>, vector<4x512xf32>, vector<4x512xf32>, vector<4x512xf32>, vector<4x512xf32>, vector<4x512xf32>, vector<4x512xf32>, vector<4x512xf32> -> vector<36x512xf32>
    %cst = arith.constant dense<0.000000e+00> : vector<4x512xf32>
    %44 = tpu.matmul %2, %43, %cst {dimension_numbers = #tpu.dot_dimension_numbers<[1], [0], [0], [1], [0, 0, 1, 1], [], []>} : vector<4x36xf32>, vector<36x512xf32>, vector<4x512xf32> -> vector<4x512xf32>
    %c0_21 = arith.constant 0 : index
    %c0_22 = arith.constant 0 : index
    %45 = vector.load %arg6[%c0_21, %c0_22] : memref<512x8xf32, #tpu.memory_space<vmem>>, vector<512x8xf32>
    %c0_23 = arith.constant 0 : index
    %c0_24 = arith.constant 0 : index
    %46 = vector.load %arg7[%c0_23, %c0_24] : memref<8x512xf32, #tpu.memory_space<vmem>>, vector<8x512xf32>
    %cst_25 = arith.constant dense<0.000000e+00> : vector<4x8xf32>
    %47 = tpu.matmul %44, %45, %cst_25 {dimension_numbers = #tpu.dot_dimension_numbers<[1], [0], [0], [1], [0, 0, 1, 1], [], []>} : vector<4x512xf32>, vector<512x8xf32>, vector<4x8xf32> -> vector<4x8xf32>
    %cst_26 = arith.constant dense<0.000000e+00> : vector<4x512xf32>
    %48 = tpu.matmul %47, %46, %cst_26 {dimension_numbers = #tpu.dot_dimension_numbers<[1], [0], [0], [1], [0, 0, 1, 1], [], []>} : vector<4x8xf32>, vector<8x512xf32>, vector<4x512xf32> -> vector<4x512xf32>
    %49 = arith.subf %44, %48 : vector<4x512xf32>
    %50 = arith.mulf %49, %49 : vector<4x512xf32>
    %cst_27 = arith.constant dense<0.000000e+00> : vector<4x8xf32>
    %51 = tpu.matmul %50, %45, %cst_27 {dimension_numbers = #tpu.dot_dimension_numbers<[1], [0], [0], [1], [0, 0, 1, 1], [], []>} : vector<4x512xf32>, vector<512x8xf32>, vector<4x8xf32> -> vector<4x8xf32>
    %cst_28 = arith.constant 9.99999974E-6 : f32
    %52 = vector.broadcast %cst_28 : f32 to vector<4x8xf32>
    %53 = arith.addf %51, %52 : vector<4x8xf32>
    %54 = math.rsqrt %53 : vector<4x8xf32>
    %cst_29 = arith.constant dense<0.000000e+00> : vector<4x512xf32>
    %55 = tpu.matmul %54, %46, %cst_29 {dimension_numbers = #tpu.dot_dimension_numbers<[1], [0], [0], [1], [0, 0, 1, 1], [], []>} : vector<4x8xf32>, vector<8x512xf32>, vector<4x512xf32> -> vector<4x512xf32>
    %56 = arith.mulf %49, %55 : vector<4x512xf32>
    %cst_30 = arith.constant 0.000000e+00 : f32
    %57 = vector.broadcast %cst_30 : f32 to vector<4x512xf32>
    %58 = arith.cmpf oge, %56, %57 : vector<4x512xf32>
    %cst_31 = arith.constant 0.00999999977 : f32
    %59 = vector.broadcast %cst_31 : f32 to vector<4x512xf32>
    %60 = arith.mulf %59, %56 : vector<4x512xf32>
    %61 = arith.select %58, %56, %60 : vector<4x512xi1>, vector<4x512xf32>
    %62 = arith.addf %1, %61 : vector<4x512xf32>
    %c0_32 = arith.constant 0 : index
    %c0_33 = arith.constant 0 : index
    %63 = vector.load %arg3[%c0_32, %c0_33] : memref<8x36xf32, #tpu.memory_space<vmem>>, vector<8x36xf32>
    %c17_i32_34 = arith.constant 17 : i32
    %64 = tpu.dynamic_rotate %62 by %c17_i32_34 dim 1 : vector<4x512xf32>, i32 -> vector<4x512xf32>
    %c0_35 = arith.constant 0 : index
    %c0_36 = arith.constant 0 : index
    %c0_37 = arith.constant 0 : index
    %65 = vector.load %arg4[%c0_35, %c0_36, %c0_37] : memref<9x1x512xf32, #tpu.memory_space<vmem>>, vector<1x1x512xf32>
    %66 = vector.shape_cast %65 : vector<1x1x512xf32> to vector<1x512xf32>
    %67 = vector.broadcast %66 : vector<1x512xf32> to vector<4x512xf32>
    %68 = arith.mulf %64, %67 : vector<4x512xf32>
    %c16_i32_38 = arith.constant 16 : i32
    %69 = tpu.dynamic_rotate %62 by %c16_i32_38 dim 1 : vector<4x512xf32>, i32 -> vector<4x512xf32>
    %c1_39 = arith.constant 1 : index
    %c0_40 = arith.constant 0 : index
    %c0_41 = arith.constant 0 : index
    %70 = vector.load %arg4[%c1_39, %c0_40, %c0_41] : memref<9x1x512xf32, #tpu.memory_space<vmem>>, vector<1x1x512xf32>
    %71 = vector.shape_cast %70 : vector<1x1x512xf32> to vector<1x512xf32>
    %72 = vector.broadcast %71 : vector<1x512xf32> to vector<4x512xf32>
    %73 = arith.mulf %69, %72 : vector<4x512xf32>
    %c15_i32_42 = arith.constant 15 : i32
    %74 = tpu.dynamic_rotate %62 by %c15_i32_42 dim 1 : vector<4x512xf32>, i32 -> vector<4x512xf32>
    %c2_43 = arith.constant 2 : index
    %c0_44 = arith.constant 0 : index
    %c0_45 = arith.constant 0 : index
    %75 = vector.load %arg4[%c2_43, %c0_44, %c0_45] : memref<9x1x512xf32, #tpu.memory_space<vmem>>, vector<1x1x512xf32>
    %76 = vector.shape_cast %75 : vector<1x1x512xf32> to vector<1x512xf32>
    %77 = vector.broadcast %76 : vector<1x512xf32> to vector<4x512xf32>
    %78 = arith.mulf %74, %77 : vector<4x512xf32>
    %c1_i32_46 = arith.constant 1 : i32
    %79 = tpu.dynamic_rotate %62 by %c1_i32_46 dim 1 : vector<4x512xf32>, i32 -> vector<4x512xf32>
    %c3_47 = arith.constant 3 : index
    %c0_48 = arith.constant 0 : index
    %c0_49 = arith.constant 0 : index
    %80 = vector.load %arg4[%c3_47, %c0_48, %c0_49] : memref<9x1x512xf32, #tpu.memory_space<vmem>>, vector<1x1x512xf32>
    %81 = vector.shape_cast %80 : vector<1x1x512xf32> to vector<1x512xf32>
    %82 = vector.broadcast %81 : vector<1x512xf32> to vector<4x512xf32>
    %83 = arith.mulf %79, %82 : vector<4x512xf32>
    %c511_i32_50 = arith.constant 511 : i32
    %84 = tpu.dynamic_rotate %62 by %c511_i32_50 dim 1 : vector<4x512xf32>, i32 -> vector<4x512xf32>
    %c5_51 = arith.constant 5 : index
    %c0_52 = arith.constant 0 : index
    %c0_53 = arith.constant 0 : index
    %85 = vector.load %arg4[%c5_51, %c0_52, %c0_53] : memref<9x1x512xf32, #tpu.memory_space<vmem>>, vector<1x1x512xf32>
    %86 = vector.shape_cast %85 : vector<1x1x512xf32> to vector<1x512xf32>
    %87 = vector.broadcast %86 : vector<1x512xf32> to vector<4x512xf32>
    %88 = arith.mulf %84, %87 : vector<4x512xf32>
    %c497_i32_54 = arith.constant 497 : i32
    %89 = tpu.dynamic_rotate %62 by %c497_i32_54 dim 1 : vector<4x512xf32>, i32 -> vector<4x512xf32>
    %c6_55 = arith.constant 6 : index
    %c0_56 = arith.constant 0 : index
    %c0_57 = arith.constant 0 : index
    %90 = vector.load %arg4[%c6_55, %c0_56, %c0_57] : memref<9x1x512xf32, #tpu.memory_space<vmem>>, vector<1x1x512xf32>
    %91 = vector.shape_cast %90 : vector<1x1x512xf32> to vector<1x512xf32>
    %92 = vector.broadcast %91 : vector<1x512xf32> to vector<4x512xf32>
    %93 = arith.mulf %89, %92 : vector<4x512xf32>
    %c496_i32_58 = arith.constant 496 : i32
    %94 = tpu.dynamic_rotate %62 by %c496_i32_58 dim 1 : vector<4x512xf32>, i32 -> vector<4x512xf32>
    %c7_59 = arith.constant 7 : index
    %c0_60 = arith.constant 0 : index
    %c0_61 = arith.constant 0 : index
    %95 = vector.load %arg4[%c7_59, %c0_60, %c0_61] : memref<9x1x512xf32, #tpu.memory_space<vmem>>, vector<1x1x512xf32>
    %96 = vector.shape_cast %95 : vector<1x1x512xf32> to vector<1x512xf32>
    %97 = vector.broadcast %96 : vector<1x512xf32> to vector<4x512xf32>
    %98 = arith.mulf %94, %97 : vector<4x512xf32>
    %c495_i32_62 = arith.constant 495 : i32
    %99 = tpu.dynamic_rotate %62 by %c495_i32_62 dim 1 : vector<4x512xf32>, i32 -> vector<4x512xf32>
    %c8_63 = arith.constant 8 : index
    %c0_64 = arith.constant 0 : index
    %c0_65 = arith.constant 0 : index
    %100 = vector.load %arg4[%c8_63, %c0_64, %c0_65] : memref<9x1x512xf32, #tpu.memory_space<vmem>>, vector<1x1x512xf32>
    %101 = vector.shape_cast %100 : vector<1x1x512xf32> to vector<1x512xf32>
    %102 = vector.broadcast %101 : vector<1x512xf32> to vector<4x512xf32>
    %103 = arith.mulf %99, %102 : vector<4x512xf32>
    %104 = tpu.concatenate %68, %73, %78, %83, %62, %88, %93, %98, %103 in 0 : vector<4x512xf32>, vector<4x512xf32>, vector<4x512xf32>, vector<4x512xf32>, vector<4x512xf32>, vector<4x512xf32>, vector<4x512xf32>, vector<4x512xf32>, vector<4x512xf32> -> vector<36x512xf32>
    %cst_66 = arith.constant dense<0.000000e+00> : vector<8x512xf32>
    %105 = tpu.matmul %63, %104, %cst_66 {dimension_numbers = #tpu.dot_dimension_numbers<[1], [0], [0], [1], [0, 0, 1, 1], [], []>} : vector<8x36xf32>, vector<36x512xf32>, vector<8x512xf32> -> vector<8x512xf32>
    %c0_67 = arith.constant 0 : index
    %c0_68 = arith.constant 0 : index
    %106 = vector.load %arg5[%c0_67, %c0_68] : memref<512x128xf32, #tpu.memory_space<vmem>>, vector<512x128xf32>
    %cst_69 = arith.constant dense<0.000000e+00> : vector<8x128xf32>
    %107 = tpu.matmul %105, %106, %cst_69 {dimension_numbers = #tpu.dot_dimension_numbers<[1], [0], [0], [1], [0, 0, 1, 1], [], []>} : vector<8x512xf32>, vector<512x128xf32>, vector<8x128xf32> -> vector<8x128xf32>
    %c0_70 = arith.constant 0 : index
    %c0_71 = arith.constant 0 : index
    %108 = vector.load %arg8[%c0_70, %c0_71] : memref<128x8xf32, #tpu.memory_space<vmem>>, vector<128x8xf32>
    %c0_72 = arith.constant 0 : index
    %c0_73 = arith.constant 0 : index
    %109 = vector.load %arg9[%c0_72, %c0_73] : memref<8x128xf32, #tpu.memory_space<vmem>>, vector<8x128xf32>
    %cst_74 = arith.constant dense<0.000000e+00> : vector<8x8xf32>
    %110 = tpu.matmul %107, %108, %cst_74 {dimension_numbers = #tpu.dot_dimension_numbers<[1], [0], [0], [1], [0, 0, 1, 1], [], []>} : vector<8x128xf32>, vector<128x8xf32>, vector<8x8xf32> -> vector<8x8xf32>
    %cst_75 = arith.constant dense<0.000000e+00> : vector<8x128xf32>
    %111 = tpu.matmul %110, %109, %cst_75 {dimension_numbers = #tpu.dot_dimension_numbers<[1], [0], [0], [1], [0, 0, 1, 1], [], []>} : vector<8x8xf32>, vector<8x128xf32>, vector<8x128xf32> -> vector<8x128xf32>
    %112 = arith.subf %107, %111 : vector<8x128xf32>
    %113 = arith.mulf %112, %112 : vector<8x128xf32>
    %cst_76 = arith.constant dense<0.000000e+00> : vector<8x8xf32>
    %114 = tpu.matmul %113, %108, %cst_76 {dimension_numbers = #tpu.dot_dimension_numbers<[1], [0], [0], [1], [0, 0, 1, 1], [], []>} : vector<8x128xf32>, vector<128x8xf32>, vector<8x8xf32> -> vector<8x8xf32>
    %cst_77 = arith.constant 9.99999974E-6 : f32
    %115 = vector.broadcast %cst_77 : f32 to vector<8x8xf32>
    %116 = arith.addf %114, %115 : vector<8x8xf32>
    %117 = math.rsqrt %116 : vector<8x8xf32>
    %cst_78 = arith.constant dense<0.000000e+00> : vector<8x128xf32>
    %118 = tpu.matmul %117, %109, %cst_78 {dimension_numbers = #tpu.dot_dimension_numbers<[1], [0], [0], [1], [0, 0, 1, 1], [], []>} : vector<8x8xf32>, vector<8x128xf32>, vector<8x128xf32> -> vector<8x128xf32>
    %119 = arith.mulf %112, %118 : vector<8x128xf32>
    %cst_79 = arith.constant 0.000000e+00 : f32
    %120 = vector.broadcast %cst_79 : f32 to vector<8x128xf32>
    %121 = arith.cmpf oge, %119, %120 : vector<8x128xf32>
    %cst_80 = arith.constant 0.00999999977 : f32
    %122 = vector.broadcast %cst_80 : f32 to vector<8x128xf32>
    %123 = arith.mulf %122, %119 : vector<8x128xf32>
    %124 = arith.select %121, %119, %123 : vector<8x128xi1>, vector<8x128xf32>
    %c0_81 = arith.constant 0 : index
    %c0_82 = arith.constant 0 : index
    %c0_83 = arith.constant 0 : index
    %125 = vector.load %arg10[%c0_81, %c0_82, %c0_83] : memref<1x8x128xf32, #tpu.memory_space<vmem>>, vector<1x8x128xf32>
    %126 = vector.shape_cast %125 : vector<1x8x128xf32> to vector<8x128xf32>
    %127 = vector.shape_cast %124 : vector<8x128xf32> to vector<1x8x128xf32>
    tpu.vector_store %arg10[%c0_81, %c0_82, %c0_83], %127 {strides = array<i32>} : memref<1x8x128xf32, #tpu.memory_space<vmem>>, vector<1x8x128xf32>,
    return
  }
  func.func @transform_0(%arg0: i32) -> (i32, i32, i32) {
    %c0_i32 = arith.constant 0 : i32
    %c0_i32_0 = arith.constant 0 : i32
    %c0_i32_1 = arith.constant 0 : i32
    return %arg0, %c0_i32, %c0_i32_0 : i32, i32, i32
  }
  func.func @transform_1(%arg0: i32) -> (i32, i32) {
    %c0_i32 = arith.constant 0 : i32
    %c0_i32_0 = arith.constant 0 : i32
    %c0_i32_1 = arith.constant 0 : i32
    return %c0_i32, %c0_i32_0 : i32, i32
  }
  func.func @transform_2(%arg0: i32) -> (i32, i32) {
    %c0_i32 = arith.constant 0 : i32
    %c0_i32_0 = arith.constant 0 : i32
    %c0_i32_1 = arith.constant 0 : i32
    return %c0_i32, %c0_i32_0 : i32, i32
  }
  func.func @transform_3(%arg0: i32) -> (i32, i32, i32) {
    %c0_i32 = arith.constant 0 : i32
    %c0_i32_0 = arith.constant 0 : i32
    %c0_i32_1 = arith.constant 0 : i32
    %c0_i32_2 = arith.constant 0 : i32
    return %c0_i32, %c0_i32_0, %c0_i32_1 : i32, i32, i32
  }
  func.func @transform_4(%arg0: i32) -> (i32, i32) {
    %c0_i32 = arith.constant 0 : i32
    %c0_i32_0 = arith.constant 0 : i32
    %c0_i32_1 = arith.constant 0 : i32
    return %c0_i32, %c0_i32_0 : i32, i32
  }
  func.func @transform_5(%arg0: i32) -> (i32, i32) {
    %c0_i32 = arith.constant 0 : i32
    %c0_i32_0 = arith.constant 0 : i32
    %c0_i32_1 = arith.constant 0 : i32
    return %c0_i32, %c0_i32_0 : i32, i32
  }
  func.func @transform_6(%arg0: i32) -> (i32, i32) {
    %c0_i32 = arith.constant 0 : i32
    %c0_i32_0 = arith.constant 0 : i32
    %c0_i32_1 = arith.constant 0 : i32
    return %c0_i32, %c0_i32_0 : i32, i32
  }
  func.func @transform_7(%arg0: i32) -> (i32, i32) {
    %c0_i32 = arith.constant 0 : i32
    %c0_i32_0 = arith.constant 0 : i32
    %c0_i32_1 = arith.constant 0 : i32
    return %c0_i32, %c0_i32_0 : i32, i32
  }
  func.func @transform_8(%arg0: i32) -> (i32, i32) {
    %c0_i32 = arith.constant 0 : i32
    %c0_i32_0 = arith.constant 0 : i32
    %c0_i32_1 = arith.constant 0 : i32
    return %c0_i32, %c0_i32_0 : i32, i32
  }
  func.func @transform_9(%arg0: i32) -> (i32, i32, i32) {
    %c0_i32 = arith.constant 0 : i32
    %c0_i32_0 = arith.constant 0 : i32
    %c0_i32_1 = arith.constant 0 : i32
    return %arg0, %c0_i32, %c0_i32_0 : i32, i32, i32
  }
}

</mosaic_0001>

<bundles_post_ra>
// kernel: cnn_combo_pool_forward.1
= control target key start
LH: loop header
LB: loop body
LE: loop exit
PB: predicated region body
PF: predicated region fallthrough
CT: control target
= control target key end

     0   :  { %14 = vsyncpa [#allocation3], 0  ;;  %s2545_s30 = smov [#allocation2]   ;;  %s3793_s0 = inlined_call_operand.vmem [shape: f32[1,4,512], index: 0, kind: input, shape index: {}]   ;;  %s3794_s1 = inlined_call_operand.vmem [shape: f32[4,36], index: 1, kind: input, shape index: {}]   ;;  %s3795_s2 = inlined_call_operand.vmem [shape: f32[8,36], index: 2, kind: input, shape index: {}]   ;;  %s3796_s3 = inlined_call_operand.vmem [shape: f32[9,1,512], index: 3, kind: input, shape index: {}]   ;;  %s3797_s4 = inlined_call_operand.vmem [shape: f32[512,128], index: 4, kind: input, shape index: {}]   ;;  %s3798_s5 = inlined_call_operand.hbm [shape: f32[512,8], index: 5, kind: input, shape index: {}]   ;;  %s3799_s6 = inlined_call_operand.vmem [shape: f32[8,512], index: 6, kind: input, shape index: {}]   ;;  %s3800_s7 = inlined_call_operand.vmem [shape: f32[128,8], index: 7, kind: input, shape index: {}]   ;;  %s3801_s8 = inlined_call_operand.vmem [shape: f32[8,128], index: 8, kind: input, shape index: {}]   ;;  %s3802_s9 = inlined_call_operand.vmem [shape: f32[1,8,128], index: 9, kind: output, shape index: {}]  }
   0x1   :  { %s30_s10 = sshll.u32 %s2545_s30, 4  ;;  %s31_s10 = int_to_ptr.vmem [resolvable:$true] %s30_s10 }
   0x2   :  { %s2531_s11 = scalar_lea.vmem %s31_s10, 8192  ;;  %p2536_p1 = scmp.lt.s32.totalorder %s31_s10, %s31_s10 }
   0x3   :  { %p2532_p0 = scmp.ne.s32.totalorder %s31_s10, %s2531_s11  ;;  %p2537_p2 = scmp.lt.s32.totalorder %s2531_s11, %s2531_s11 }
   0x5   :  { %p2538_p3 = por %p2537_p2, %p2536_p1 }
   0x7   :  { %p2539_p4 = pnand %p2538_p3, %p2532_p0 }
   0x9   :  { %2542 = shalt.err (!%p2539_p4)
}
   0xa   :  { %s2546_s12 = smov 128   ;;  %s2547_s13 = smov 8  }
   0xb   :  { %36 = dma.hbm_to_vmem [thread:$0]  %s3798_s5, 8192, %s31_s10, [#allocation3], %s2546_s12, %s2546_s12, %s2547_s13  }
   0xc   :  { %2543 = dma.done.wait [#allocation3], 8192  }
   0xd   :  { %2544 = vsyncadd [#allocation3], 4294959104  ;;  %v2614_v0 = vld [vmem:[%s3793_s0 + $0x8] sm:$0xff]  ;;  %v2619_v1 = vld [vmem:[%s3793_s0] sm:$0xff]  ;;  %s2548_s20 = smov 112   ;;  %s2549_s5 = smov 111   ;;  %v63_v7 = vlaneseq }
   0xe   :  { %300 = vrot.lane.b32.xlu1 %v2614_v0, %s2548_s20  ;;  %296 = vrot.lane.b32.xlu0 %v2619_v1, %s2548_s20  ;;  %v2627_v2 = vcombine.high %v2614_v0, %v2614_v0  ;;  %v2635_v3 = vcombine.high %v2619_v1, %v2619_v1  ;;  %s2550_s21 = smov 127   ;;  %s2551_s22 = smov 113   ;;  %v3803_v4 = vmov 0.0   ;;  %v2155_v15 = vld [vmem:[%s3796_s3 + $0x20] sm:$0xf]  ;;  %vm424_vm1 = vcmask 1043456  }
   0xf   :  { %s2552_s23 = smov 1   ;;  %s2553_s24 = smov 16   ;;  %521 = vmatprep.mubr.f32.mxu0 %v3803_v4  ;;  %592 = vmatprep.mubr.f32.mxu1 %v3803_v4  ;;  %v73_v8 = vshrl.u32 %v63_v7, 7  ;;  %v2695_v11 = vand.u32 127, %v63_v7  ;;  %v2154_v33 = vld [vmem:[%s3796_s3 + $0x1c] sm:$0xf] }
  0x10   :  { %s2554_s25 = smov 15   ;;  %s2556_s26 = smov 17   ;;  %v2152_v39 = vld [vmem:[%s3796_s3 + $0x14] sm:$0xf]  ;;  %v2153_v51 = vld [vmem:[%s3796_s3 + $0x18] sm:$0xf] }
  0x11   :  { %3855 = vst [vmem:[#allocation5_spill] sm:$0xff] %v2695_v11  ;;  %v2697_v12 = vsub.s32 0, %v73_v8  ;;  %v2699_v13 = vsub.s32 2, %v73_v8  ;;  %v2701_v14 = vsub.s32 3, %v73_v8  ;;  %v2706_v17 = vsub.s32 1, %v73_v8  ;;  %v3043_v4 = vld [vmem:[#allocation2 + $0x1c0] sm:$0xff] }
  0x12   :  { %302 = vrot.lane.b32.xlu1 %v2627_v2, %s2548_s20  ;;  %336 = vrot.lane.b32.xlu0 %v2619_v1, %s2549_s5  ;;  %vm344_vm0 = vcmp.lt.s32.totalorder %v2695_v11, 111  ;;  %vm304_vm2 = vcmp.lt.s32.totalorder %v2695_v11, 112  ;;  %vm224_vm3 = vcmp.lt.s32.totalorder %v2695_v11, 127  ;;  %vm264_vm4 = vcmp.lt.s32.totalorder %v2695_v11, 113 }
  0x13   :  { %v2710_v19 = vrot.slane %v2155_v15, %v2699_v13  ;;  %v2713_v20 = vrot.slane %v2155_v15, %v2701_v14  ;;  %v2716_v21 = vrot.slane %v2155_v15, %v2706_v17  ;;  %v2719_v22 = vrot.slane %v2155_v15, %v2697_v12 }
  0x14   :  { %v2742_v36 = vrot.slane %v2154_v33, %v2699_v13  ;;  %v2745_v37 = vrot.slane %v2154_v33, %v2701_v14  ;;  %v2748_v38 = vrot.slane %v2154_v33, %v2706_v17  ;;  %v2759_v42 = vrot.slane %v2152_v39, %v2701_v14 }
  0x15   :  { %3856 = vst [vmem:[#allocation6_spill] sm:$0xff] %v2710_v19  ;;  %3857 = vst [vmem:[#allocation7_spill] sm:$0xff] %v2713_v20  ;;  %v2762_v45 = vrot.slane %v2154_v33, %v2697_v12  ;;  %v2769_v48 = vrot.slane %v2152_v39, %v2697_v12  ;;  %v2772_v49 = vrot.slane %v2152_v39, %v2706_v17  ;;  %vm184_vm5 = vcmp.lt.s32.totalorder %v2695_v11, 1 }
  0x16   :  { %338 = vrot.lane.b32.xlu1 %v2635_v3, %s2549_s5  ;;  %298 = vrot.lane.b32.xlu0 %v2635_v3, %s2548_s20  ;;  %3858 = vst [vmem:[#allocation8_spill] sm:$0xff] %v2716_v21  ;;  %3859 = vst [vmem:[#allocation9_spill] sm:$0xff] %v2719_v22  ;;  %v2775_v50 = vrot.slane %v2152_v39, %v2699_v13  ;;  %v2794_v62 = vrot.slane %v2153_v51, %v2697_v12  ;;  %vm104_vm6 = vcmp.lt.s32.totalorder %v2695_v11, 16  ;;  %vm441_vm9 = vcmask 293888  }
  0x17   :  { %3860 = vst [vmem:[#allocation10_spill] sm:$0xff] %v2742_v36  ;;  %3861 = vst [vmem:[#allocation11_spill] sm:$0xff] %v2745_v37  ;;  %v2797_v63 = vrot.slane %v2153_v51, %v2701_v14  ;;  %v2803_v7 = vrot.slane %v2153_v51, %v2706_v17  ;;  %v2806_v8 = vrot.slane %v2153_v51, %v2699_v13  ;;  %vm144_vm7 = vcmp.lt.s32.totalorder %v2695_v11, 15 }
  0x18   :  { %3862 = vst [vmem:[#allocation12_spill] sm:$0xff] %v2748_v38  ;;  %3863 = vst [vmem:[#allocation13_spill] sm:$0xff] %v2759_v42  ;;  %vm65_vm8 = vcmp.lt.s32.totalorder %v2695_v11, 17  ;;  %v3147_v11 = vld [vmem:[#allocation2 + $0x100] sm:$0xff]  ;;  %vm807_vm10 = vcmask 64512   ;;  %vm2557_vm15 = vmmov 0  }
  0x19   :  { %3864 = vst [vmem:[#allocation14_spill] sm:$0xff] %v2762_v45  ;;  %3865 = vst [vmem:[#allocation15_spill] sm:$0xff] %v2769_v48 }
  0x1a   :  { %342 = vrot.lane.b32.xlu1 %v2627_v2, %s2549_s5  ;;  %340 = vrot.lane.b32.xlu0 %v2614_v0, %s2549_s5  ;;  %3866 = vst [vmem:[#allocation16_spill] sm:$0xff] %v2772_v49  ;;  %3867 = vst [vmem:[#allocation17_spill] sm:$0xff] %v2775_v50 }
  0x1b   :  { %3868 = vst [vmem:[#allocation18_spill] sm:$0xff] %v2794_v62  ;;  %3869 = vst [vmem:[#allocation19_spill] sm:$0xff] %v2797_v63 }
  0x1c   :  { %3870 = vst [vmem:[#allocation20_spill] sm:$0xff] %v2803_v7  ;;  %3871 = vst [vmem:[#allocation21_spill] sm:$0xff] %v2806_v8 }
  0x1d   :  { %3896 = vst [vmem:[#allocation46_spill] sm:$0xff] %v3147_v11 }
  0x1e   :  { %218 = vrot.lane.b32.xlu1 %v2635_v3, %s2550_s21  ;;  %216 = vrot.lane.b32.xlu0 %v2619_v1, %s2550_s21 }
  0x22   :  { %222 = vrot.lane.b32.xlu1 %v2627_v2, %s2550_s21  ;;  %220 = vrot.lane.b32.xlu0 %v2614_v0, %s2550_s21 }
  0x26   :  { %258 = vrot.lane.b32.xlu1 %v2635_v3, %s2551_s22  ;;  %256 = vrot.lane.b32.xlu0 %v2619_v1, %s2551_s22 }
  0x2a   :  { %262 = vrot.lane.b32.xlu1 %v2627_v2, %s2551_s22  ;;  %260 = vrot.lane.b32.xlu0 %v2614_v0, %s2551_s22 }
  0x2e   :  { %178 = vrot.lane.b32.xlu1 %v2635_v3, %s2552_s23  ;;  %176 = vrot.lane.b32.xlu0 %v2619_v1, %s2552_s23 }
  0x32   :  { %182 = vrot.lane.b32.xlu1 %v2627_v2, %s2552_s23  ;;  %180 = vrot.lane.b32.xlu0 %v2614_v0, %s2552_s23 }
  0x36   :  { %98 = vrot.lane.b32.xlu1 %v2635_v3, %s2553_s24  ;;  %96 = vrot.lane.b32.xlu0 %v2619_v1, %s2553_s24 }
  0x3a   :  { %102 = vrot.lane.b32.xlu1 %v2627_v2, %s2553_s24  ;;  %100 = vrot.lane.b32.xlu0 %v2614_v0, %s2553_s24 }
  0x3e   :  { %138 = vrot.lane.b32.xlu1 %v2635_v3, %s2554_s25  ;;  %136 = vrot.lane.b32.xlu0 %v2619_v1, %s2554_s25 }
  0x42   :  { %142 = vrot.lane.b32.xlu1 %v2627_v2, %s2554_s25  ;;  %140 = vrot.lane.b32.xlu0 %v2614_v0, %s2554_s25 }
  0x46   :  { %57 = vrot.lane.b32.xlu1 %v2635_v3, %s2556_s26  ;;  %55 = vrot.lane.b32.xlu0 %v2619_v1, %s2556_s26 }
  0x4a   :  { %61 = vrot.lane.b32.xlu1 %v2627_v2, %s2556_s26  ;;  %59 = vrot.lane.b32.xlu0 %v2614_v0, %s2556_s26 }
  0x80   :  { %v301_v5 = vpop.permute.xlu1 %300  ;;  %v297_v6 = vpop.permute.xlu0 %296 }
  0x84   :  { %v303_v9 = vpop.permute.xlu1 %302  ;;  %v337_v10 = vpop.permute.xlu0 %336 }
  0x85   :  { %v305_v40 = vsel %vm304_vm2, %v301_v5, %v303_v9  ;;  %v308_v41 = vsel %vm304_vm2, %v303_v9, %v297_v6 }
  0x86   :  { %v334_v52 = vmul.f32 %v2742_v36, %v305_v40  ;;  %v335_v53 = vmul.f32 %v2745_v37, %v308_v41  ;;  %v3115_v37 = vld [vmem:[#allocation2 + $0x190] sm:$0xff] }
  0x87   :  { %v3125_v36 = vld [vmem:[#allocation2 + $0x110] sm:$0xff] }
  0x88   :  { %v339_v16 = vpop.permute.xlu1 %338  ;;  %v299_v18 = vpop.permute.xlu0 %298  ;;  %3889 = vst [vmem:[#allocation39_spill] sm:$0xff] %v3125_v36 }
  0x89   :  { %v347_v23 = vsel %vm344_vm0, %v337_v10, %v339_v16  ;;  %v306_v46 = vsel %vm304_vm2, %v299_v18, %v301_v5  ;;  %v307_v54 = vsel %vm304_vm2, %v297_v6, %v299_v18  ;;  %v419_v18 = vrot.slane %v335_v53, 4 }
  0x8a   :  { %v372_v32 = vmul.f32 %v2719_v22, %v347_v23  ;;  %v333_v56 = vmul.f32 %v2748_v38, %v306_v46  ;;  %v332_v9 = vmul.f32 %v2762_v45, %v307_v54  ;;  %v3129_v38 = vld [vmem:[#allocation2 + $0x8] sm:$0xff]  ;;  %v3141_v22 = vld [vmem:[#allocation2] sm:$0xff] }
  0x8b   :  { %3890 = vst [vmem:[#allocation40_spill] sm:$0xff] %v3129_v38  ;;  %v3131_v45 = vld [vmem:[#allocation2 + $0x188] sm:$0xff]  ;;  %3894 = vst [vmem:[#allocation44_spill] sm:$0xff] %v3141_v22 }
  0x8c   :  { %v343_v24 = vpop.permute.xlu1 %342  ;;  %v341_v25 = vpop.permute.xlu0 %340  ;;  %v417_v23 = vrot.slane %v333_v56, 4  ;;  %3891 = vst [vmem:[#allocation41_spill] sm:$0xff] %v3131_v45 }
  0x8d   :  { %v348_v26 = vsel %vm344_vm0, %v343_v24, %v337_v10  ;;  %v345_v27 = vsel %vm344_vm0, %v341_v25, %v343_v24  ;;  %v346_v28 = vsel %vm344_vm0, %v339_v16, %v341_v25  ;;  %v418_v16 = vrot.slane %v334_v52, 4 }
  0x8e   :  { %v374_v29 = vmul.f32 %v2710_v19, %v345_v27  ;;  %v375_v30 = vmul.f32 %v2713_v20, %v348_v26  ;;  %v373_v31 = vmul.f32 %v2716_v21, %v346_v28  ;;  %v3135_v20 = vld [vmem:[#allocation2 + $0x80] sm:$0xff]  ;;  %v3137_v19 = vld [vmem:[#allocation2 + $0x108] sm:$0xff] }
  0x8f   :  { %3892 = vst [vmem:[#allocation42_spill] sm:$0xff] %v3135_v20  ;;  %3893 = vst [vmem:[#allocation43_spill] sm:$0xff] %v3137_v19  ;;  %v3143_v21 = vld [vmem:[#allocation2 + $0x180] sm:$0xff] }
  0x90   :  { %2159 = vmatprep.subr.msk.mxu1 %vm424_vm1, %v375_v30  ;;  %v219_v34 = vpop.permute.xlu1 %218  ;;  %2156 = vmatprep.subr.msk.mxu0 %vm424_vm1, %v373_v31  ;;  %v217_v35 = vpop.permute.xlu0 %216  ;;  %3895 = vst [vmem:[#allocation45_spill] sm:$0xff] %v3143_v21 }
  0x91   :  { %2157 = vmatpush1.msk.msra.mxu0 %vm424_vm1, %v372_v32  ;;  %2160 = vmatpush1.msk.msra.mxu1 %vm424_vm1, %v374_v29  ;;  %v227_v57 = vsel %vm224_vm3, %v217_v35, %v219_v34 }
  0x92   :  { %v252_v10 = vmul.f32 %v2769_v48, %v227_v57  ;;  %v3113_v48 = vld [vmem:[#allocation2 + $0x10] sm:$0xff] }
  0x94   :  { %v223_v43 = vpop.permute.xlu1 %222  ;;  %v221_v44 = vpop.permute.xlu0 %220  ;;  %v404_v39 = vrot.slane %v252_v10, 4 }
  0x95   :  { %v228_v47 = vsel %vm224_vm3, %v223_v43, %v217_v35  ;;  %v226_v55 = vsel %vm224_vm3, %v219_v34, %v221_v44  ;;  %v225_v59 = vsel %vm224_vm3, %v221_v44, %v223_v43  ;;  %v416_v35 = vrot.slane %v332_v9, 4 }
  0x96   :  { %v255_v58 = vmul.f32 %v2759_v42, %v228_v47  ;;  %v253_v5 = vmul.f32 %v2772_v49, %v226_v55  ;;  %v254_v15 = vmul.f32 %v2775_v50, %v225_v59  ;;  %v433_v54 = vsel %vm424_vm1, %v2619_v1, %v404_v39  ;;  %v3107_v50 = vld [vmem:[#allocation2 + $0x90] sm:$0xff]  ;;  %v3109_v42 = vld [vmem:[#allocation2 + $0x118] sm:$0xff]  ;;  %v3123_v49 = vld [vmem:[#allocation2 + $0x88] sm:$0xff] }
  0x97   :  { %3888 = vst [vmem:[#allocation38_spill] sm:$0xff] %v3123_v49 }
  0x98   :  { %v259_v60 = vpop.permute.xlu1 %258  ;;  %v257_v61 = vpop.permute.xlu0 %256  ;;  %v407_v24 = vrot.slane %v255_v58, 4  ;;  %v405_v31 = vrot.slane %v253_v5, 4  ;;  %v406_v40 = vrot.slane %v254_v15, 4  ;;  %v2151_v58 = vld [vmem:[%s3796_s3 + $0xc] sm:$0xf] }
  0x99   :  { %v267_v6 = vsel %vm264_vm4, %v257_v61, %v259_v60  ;;  %v2838_v59 = vrot.slane %v2151_v58, %v2706_v17  ;;  %v2851_v5 = vrot.slane %v2151_v58, %v2699_v13 }
  0x9a   :  { %v292_v27 = vmul.f32 %v2794_v62, %v267_v6  ;;  %v434_v52 = vsel %vm424_vm1, %v2635_v3, %v405_v31  ;;  %v436_v53 = vsel %vm424_vm1, %v2627_v2, %v407_v24  ;;  %v435_v55 = vsel %vm424_vm1, %v2614_v0, %v406_v40  ;;  %v3103_v62 = vld [vmem:[#allocation2 + $0x198] sm:$0xff] }
  0x9b   :  { %3872 = vst [vmem:[#allocation22_spill] sm:$0xff] %v2838_v59  ;;  %v2843_v0 = vrot.slane %v2151_v58, %v2697_v12  ;;  %3874 = vst [vmem:[#allocation24_spill] sm:$0xff] %v2851_v5  ;;  %v2854_v6 = vrot.slane %v2151_v58, %v2701_v14 }
  0x9c   :  { %v263_v25 = vpop.permute.xlu1 %262  ;;  %v261_v26 = vpop.permute.xlu0 %260  ;;  %v437_v51 = vsel %vm424_vm1, %v292_v27, %v416_v35 }
  0x9d   :  { %v268_v28 = vsel %vm264_vm4, %v263_v25, %v257_v61  ;;  %v265_v29 = vsel %vm264_vm4, %v261_v26, %v263_v25  ;;  %v266_v30 = vsel %vm264_vm4, %v259_v60, %v261_v26  ;;  %3873 = vst [vmem:[#allocation23_spill] sm:$0xff] %v2843_v0  ;;  %v2150_v60 = vld [vmem:[%s3796_s3 + $0x8] sm:$0xf]  ;;  %3875 = vst [vmem:[#allocation25_spill] sm:$0xff] %v2854_v6 }
  0x9e   :  { %v295_v32 = vmul.f32 %v2797_v63, %v268_v28  ;;  %v293_v33 = vmul.f32 %v2803_v7, %v266_v30  ;;  %v294_v34 = vmul.f32 %v2806_v8, %v265_v29  ;;  %v2867_v24 = vrot.slane %v2150_v60, %v2706_v17  ;;  %v3095_v63 = vld [vmem:[#allocation2 + $0x98] sm:$0xff]  ;;  %v3097_v8 = vld [vmem:[#allocation2 + $0x120] sm:$0xff] }
  0x9f   :  { %v2889_v39 = vrot.slane %v2150_v60, %v2697_v12  ;;  %v3101_v7 = vld [vmem:[#allocation2 + $0x18] sm:$0xff] }
  0xa0   :  { %v179_v41 = vpop.permute.xlu1 %178  ;;  %v177_v43 = vpop.permute.xlu0 %176  ;;  %v438_v44 = vsel %vm424_vm1, %v293_v33, %v417_v23  ;;  %v440_v46 = vsel %vm424_vm1, %v295_v32, %v419_v18  ;;  %v439_v47 = vsel %vm424_vm1, %v294_v34, %v418_v16  ;;  %v2149_v18 = vld [vmem:[%s3796_s3 + $0x4] sm:$0xf]  ;;  %3876 = vst [vmem:[#allocation26_spill] sm:$0xff] %v2867_v24  ;;  %v70_v32 = vld [vmem:[%s3796_s3] sm:$0xf] }
  0xa1   :  { %481 = vmatprep.subr.mxu0 %v438_v44  ;;  %552 = vmatprep.subr.mxu1 %v440_v46  ;;  %v187_v1 = vsel %vm184_vm5, %v177_v43, %v179_v41  ;;  %v2873_v28 = vrot.slane %v2149_v18, %v2706_v17  ;;  %v2876_v29 = vrot.slane %v2149_v18, %v2697_v12 }
  0xa2   :  { %482 = vmatpush1.msra.mxu0 %v437_v51  ;;  %553 = vmatpush1.msra.mxu1 %v439_v47  ;;  %v213_v23 = vmul.f32 %v2838_v59, %v187_v1  ;;  %v2884_v34 = vrot.slane %v2149_v18, %v2699_v13  ;;  %3880 = vst [vmem:[#allocation30_spill] sm:$0xff] %v2889_v39  ;;  %v3091_v59 = vld [vmem:[#allocation2 + $0x1a0] sm:$0xff] }
  0xa3   :  { %483 = vmatprep.subr.mxu0 %v434_v52  ;;  %554 = vmatprep.subr.mxu1 %v436_v53  ;;  %3877 = vst [vmem:[#allocation27_spill] sm:$0xff] %v2873_v28  ;;  %3878 = vst [vmem:[#allocation28_spill] sm:$0xff] %v2876_v29  ;;  %v2896_v44 = vrot.slane %v2150_v60, %v2701_v14  ;;  %v2899_v47 = vrot.slane %v2149_v18, %v2701_v14 }
  0xa4   :  { %v183_v56 = vpop.permute.xlu1 %182  ;;  %484 = vmatpush1.msra.mxu0 %v433_v54  ;;  %555 = vmatpush1.msra.mxu1 %v435_v55  ;;  %v181_v57 = vpop.permute.xlu0 %180  ;;  %3879 = vst [vmem:[#allocation29_spill] sm:$0xff] %v2884_v34  ;;  %v393_v40 = vrot.slane %v213_v23, 4  ;;  %v2903_v51 = vrot.slane %v70_v32, %v2706_v17  ;;  %v2923_v23 = vrot.slane %v70_v32, %v2697_v12 }
  0xa5   :  { %v188_v61 = vsel %vm184_vm5, %v183_v56, %v177_v43  ;;  %v185_v15 = vsel %vm184_vm5, %v181_v57, %v183_v56  ;;  %v186_v16 = vsel %vm184_vm5, %v179_v41, %v181_v57  ;;  %v2893_v43 = vrot.slane %v2150_v60, %v2699_v13  ;;  %3882 = vst [vmem:[#allocation32_spill] sm:$0xff] %v2896_v44 }
  0xa6   :  { %v212_v25 = vmul.f32 %v2843_v0, %v188_v61  ;;  %v214_v26 = vmul.f32 %v2851_v5, %v186_v16  ;;  %v215_v27 = vmul.f32 %v2854_v6, %v185_v15  ;;  %3883 = vst [vmem:[#allocation33_spill] sm:$0xff] %v2899_v47  ;;  %3884 = vst [vmem:[#allocation34_spill] sm:$0xff] %v2903_v51  ;;  %v3079_v5 = vld [vmem:[#allocation2 + $0x1a8] sm:$0xff]  ;;  %v3089_v0 = vld [vmem:[#allocation2 + $0x20] sm:$0xff] }
  0xa7   :  { %3881 = vst [vmem:[#allocation31_spill] sm:$0xff] %v2893_v43  ;;  %3885 = vst [vmem:[#allocation35_spill] sm:$0xff] %v2923_v23  ;;  %v2933_v12 = vrot.slane %v70_v32, %v2699_v13  ;;  %v3085_v6 = vld [vmem:[#allocation2 + $0x128] sm:$0xff] }
  0xa8   :  { %v99_v3 = vpop.permute.xlu1 %98  ;;  %v97_v2 = vpop.permute.xlu0 %96  ;;  %v392_v46 = vrot.slane %v212_v25, 4  ;;  %v394_v52 = vrot.slane %v214_v26, 4  ;;  %v395_v53 = vrot.slane %v215_v27, 4 }
  0xa9   :  { %v107_v33 = vsel %vm104_vm6, %v97_v2, %v99_v3  ;;  %3886 = vst [vmem:[#allocation36_spill] sm:$0xff] %v2933_v12 }
  0xaa   :  { %v133_v54 = vmul.f32 %v2873_v28, %v107_v33  ;;  %v3073_v28 = vld [vmem:[#allocation2 + $0x130] sm:$0xff] }
  0xac   :  { %v103_v9 = vpop.permute.xlu1 %102  ;;  %v101_v10 = vpop.permute.xlu0 %100 }
  0xad   :  { %v108_v58 = vsel %vm104_vm6, %v103_v9, %v97_v2  ;;  %v106_v61 = vsel %vm104_vm6, %v99_v3, %v101_v10  ;;  %v105_v2 = vsel %vm104_vm6, %v101_v10, %v103_v9  ;;  %v381_v9 = vrot.slane %v133_v54, 4 }
  0xae   :  { %v132_v25 = vmul.f32 %v2876_v29, %v108_v58  ;;  %v134_v33 = vmul.f32 %v2884_v34, %v106_v61  ;;  %v135_v10 = vmul.f32 %v2899_v47, %v105_v2  ;;  %v2960_v2 = vld [vmem:[#allocation2 + $0x1f8] sm:$0xff]  ;;  %v3065_v29 = vld [vmem:[#allocation2 + $0x30] sm:$0xff] }
  0xaf   :  { %v3055_v34 = vld [vmem:[#allocation2 + $0x1b8] sm:$0xff] }
  0xb0   :  { %v139_v30 = vpop.permute.xlu1 %138  ;;  %v137_v31 = vpop.permute.xlu0 %136  ;;  %v383_v58 = vrot.slane %v135_v10, 4  ;;  %v2989_v10 = vld [vmem:[#allocation2 + $0x168] sm:$0xff]  ;;  %v3061_v47 = vld [vmem:[#allocation2 + $0x138] sm:$0xff] }
  0xb1   :  { %v147_v35 = vsel %vm144_vm7, %v137_v31, %v139_v30 }
  0xb2   :  { %v173_v41 = vmul.f32 %v2867_v24, %v147_v35  ;;  %v3083_v24 = vld [vmem:[#allocation2 + $0xa0] sm:$0xff] }
  0xb4   :  { %v143_v55 = vpop.permute.xlu1 %142  ;;  %v141_v56 = vpop.permute.xlu0 %140  ;;  %v430_v57 = vsel %vm424_vm1, %v173_v41, %v393_v40  ;;  %v2938_v41 = vrot.slane %v70_v32, %v2701_v14 }
  0xb5   :  { %v148_v1 = vsel %vm144_vm7, %v143_v55, %v137_v31  ;;  %v145_v60 = vsel %vm144_vm7, %v141_v56, %v143_v55  ;;  %v146_v17 = vsel %vm144_vm7, %v139_v30, %v141_v56  ;;  %485 = vmatprep.subr.mxu0 %v430_v57  ;;  %v382_v56 = vrot.slane %v134_v33, 4  ;;  %v2981_v33 = vld [vmem:[#allocation2 + $0x68] sm:$0xff] }
  0xb6   :  { %v172_v15 = vmul.f32 %v2889_v39, %v148_v1  ;;  %v174_v16 = vmul.f32 %v2893_v43, %v146_v17  ;;  %v175_v18 = vmul.f32 %v2896_v44, %v145_v60  ;;  %3887 = vst [vmem:[#allocation37_spill] sm:$0xff] %v2938_v41  ;;  %v48_v60 = vld [vmem:[%s3794_s1] sm:$0xf]  ;;  %v3067_v44 = vld [vmem:[#allocation2 + $0x1b0] sm:$0xff]  ;;  %v3071_v39 = vld [vmem:[#allocation2 + $0xa8] sm:$0xff] }
  0xb7   :  { %v3077_v43 = vld [vmem:[#allocation2 + $0x28] sm:$0xff] }
  0xb8   :  { %v58_v26 = vpop.permute.xlu1 %57  ;;  %v56_v27 = vpop.permute.xlu0 %55  ;;  %v429_v30 = vsel %vm424_vm1, %v172_v15, %v392_v46  ;;  %v432_v3 = vsel %vm424_vm1, %v175_v18, %v395_v53  ;;  %v431_v31 = vsel %vm424_vm1, %v174_v16, %v394_v52  ;;  %v380_v46 = vrot.slane %v132_v25, 4  ;;  %v2956_v16 = vld [vmem:[#allocation2 + $0xf8] sm:$0xff]  ;;  %v2963_v25 = vld [vmem:[#allocation2 + $0xf0] sm:$0xff] }
  0xb9   :  { %v68_v35 = vsel %vm65_vm8, %v56_v27, %v58_v26  ;;  %486 = vmatpush1.msra.mxu0 %v429_v30  ;;  %556 = vmatprep.subr.mxu1 %v432_v3  ;;  %v2958_v18 = vld [vmem:[#allocation2 + $0x78] sm:$0xff]  ;;  %v2971_v30 = vld [vmem:[#allocation2 + $0x1f0] sm:$0xff]  ;;  %v2975_v3 = vld [vmem:[#allocation2 + $0xe8] sm:$0xff] }
  0xba   :  { %v93_v40 = vmul.f32 %v2903_v51, %v68_v35  ;;  %557 = vmatpush1.msra.mxu1 %v431_v31  ;;  %v2977_v31 = vld [vmem:[#allocation2 + $0x170] sm:$0xff]  ;;  %v2983_v35 = vld [vmem:[#allocation2 + $0x1e8] sm:$0xff] }
  0xbb   :  { %v3059_v51 = vld [vmem:[#allocation2 + $0xb0] sm:$0xff] }
  0xbc   :  { %v62_v52 = vpop.permute.xlu1 %61  ;;  %v60_v53 = vpop.permute.xlu0 %59  ;;  %v426_v55 = vsel %vm424_vm1, %v93_v40, %v381_v9  ;;  %v2987_v9 = vld [vmem:[#allocation2 + $0xe0] sm:$0xff] }
  0xbd   :  { %v69_v57 = vsel %vm65_vm8, %v62_v52, %v56_v27  ;;  %v66_v13 = vsel %vm65_vm8, %v60_v53, %v62_v52  ;;  %v67_v54 = vsel %vm65_vm8, %v58_v26, %v60_v53  ;;  %487 = vmatprep.subr.mxu0 %v426_v55  ;;  %v2965_v26 = vld [vmem:[#allocation2 + $0x178] sm:$0xff]  ;;  %v2969_v27 = vld [vmem:[#allocation2 + $0x70] sm:$0xff]  ;;  %v2993_v40 = vld [vmem:[#allocation2 + $0x60] sm:$0xff] }
  0xbe   :  { %v92_v14 = vmul.f32 %v2923_v23, %v69_v57  ;;  %v94_v32 = vmul.f32 %v2933_v12, %v67_v54  ;;  %v95_v1 = vmul.f32 %v2938_v41, %v66_v13  ;;  %v2999_v52 = vld [vmem:[#allocation2 + $0xd8] sm:$0xff]  ;;  %v3001_v53 = vld [vmem:[#allocation2 + $0x160] sm:$0xff]  ;;  %v3011_v57 = vld [vmem:[#allocation2 + $0xd0] sm:$0xff] }
  0xbf   :  { %v3005_v55 = vld [vmem:[#allocation2 + $0x58] sm:$0xff]  ;;  %v3017_v54 = vld [vmem:[#allocation2 + $0x50] sm:$0xff]  ;;  %v3049_v23 = vld [vmem:[#allocation2 + $0x140] sm:$0xff] }
  0xc0   :  { %v425_v17 = vsel %vm424_vm1, %v92_v14, %v380_v46  ;;  %v428_v61 = vsel %vm424_vm1, %v95_v1, %v383_v58  ;;  %v427_v15 = vsel %vm424_vm1, %v94_v32, %v382_v56  ;;  %v2995_v46 = vld [vmem:[#allocation2 + $0x1e0] sm:$0xff]  ;;  %v3007_v56 = vld [vmem:[#allocation2 + $0x1d8] sm:$0xff]  ;;  %v3019_v58 = vld [vmem:[#allocation2 + $0x1d0] sm:$0xff] }
  0xc1   :  { %488 = vmatpush1.msra.mxu0 %v425_v17  ;;  %558 = vmatprep.subr.mxu1 %v428_v61  ;;  %v3013_v13 = vld [vmem:[#allocation2 + $0x158] sm:$0xff]  ;;  %v3023_v14 = vld [vmem:[#allocation2 + $0xc8] sm:$0xff]  ;;  %v3025_v32 = vld [vmem:[#allocation2 + $0x150] sm:$0xff] }
  0xc2   :  { %2158 = vmatmul.mubr.msk.f32.vlgmr.msra.gmra.mxu0 %vm441_vm9, %v48_v60  ;;  %559 = vmatpush1.msra.mxu1 %v427_v15  ;;  %v3029_v1 = vld [vmem:[#allocation2 + $0x48] sm:$0xff]  ;;  %v3035_v17 = vld [vmem:[#allocation2 + $0xc0] sm:$0xff]  ;;  %v3047_v41 = vld [vmem:[#allocation2 + $0xb8] sm:$0xff] }
  0xc3   :  { %2161 = vmatmul.mubr.msk.f32.vlgmr.msra.gmra.mxu1 %vm441_vm9, %v48_v60  ;;  %2174 = vmatprep.subr.mxu0 %v2956_v16  ;;  %v3031_v60 = vld [vmem:[#allocation2 + $0x1c8] sm:$0xff]  ;;  %v3041_v15 = vld [vmem:[#allocation2 + $0x40] sm:$0xff]  ;;  %v3053_v12 = vld [vmem:[#allocation2 + $0x38] sm:$0xff] }
  0xc4   :  { %2175 = vmatpush3.msra.mxu0 %v2958_v18  ;;  %2209 = vmatprep.subr.mxu1 %v2960_v2  ;;  %v3037_v61 = vld [vmem:[#allocation2 + $0x148] sm:$0xff] }
  0xc5   :  { %2176 = vmatprep.subr.mxu0 %v2963_v25  ;;  %2210 = vmatpush3.msra.mxu1 %v2965_v26 }
  0xc6   :  { %2177 = vmatpush3.msra.mxu0 %v2969_v27  ;;  %2211 = vmatprep.subr.mxu1 %v2971_v30 }
  0xc7   :  { %2178 = vmatprep.subr.mxu0 %v2975_v3  ;;  %2212 = vmatpush3.msra.mxu1 %v2977_v31 }
  0xc8   :  { %2179 = vmatpush3.msra.mxu0 %v2981_v33  ;;  %2213 = vmatprep.subr.mxu1 %v2983_v35 }
  0xc9   :  { %2180 = vmatprep.subr.mxu0 %v2987_v9  ;;  %2214 = vmatpush3.msra.mxu1 %v2989_v10 }
  0xca   :  { %2181 = vmatpush3.msra.mxu0 %v2993_v40  ;;  %2215 = vmatprep.subr.mxu1 %v2995_v46 }
  0xcb   :  { %2182 = vmatprep.subr.mxu0 %v2999_v52  ;;  %2216 = vmatpush3.msra.mxu1 %v3001_v53 }
  0xcc   :  { %2183 = vmatpush3.msra.mxu0 %v3005_v55  ;;  %2217 = vmatprep.subr.mxu1 %v3007_v56 }
  0xcd   :  { %2184 = vmatprep.subr.mxu0 %v3011_v57  ;;  %2218 = vmatpush3.msra.mxu1 %v3013_v13 }
  0xce   :  { %2185 = vmatpush3.msra.mxu0 %v3017_v54  ;;  %2219 = vmatprep.subr.mxu1 %v3019_v58 }
  0xcf   :  { %2186 = vmatprep.subr.mxu0 %v3023_v14  ;;  %2220 = vmatpush3.msra.mxu1 %v3025_v32 }
  0xd0   :  { %2187 = vmatpush3.msra.mxu0 %v3029_v1  ;;  %2221 = vmatprep.subr.mxu1 %v3031_v60 }
  0xd1   :  { %2188 = vmatprep.subr.mxu0 %v3035_v17  ;;  %2222 = vmatpush3.msra.mxu1 %v3037_v61 }
  0xd2   :  { %2189 = vmatpush3.msra.mxu0 %v3041_v15  ;;  %2223 = vmatprep.subr.mxu1 %v3043_v4 }
  0xd3   :  { %2190 = vmatprep.subr.mxu0 %v3047_v41  ;;  %2224 = vmatpush3.msra.mxu1 %v3049_v23 }
  0xd4   :  { %2191 = vmatpush3.msra.mxu0 %v3053_v12  ;;  %2225 = vmatprep.subr.mxu1 %v3055_v34 }
  0xd5   :  { %2192 = vmatprep.subr.mxu0 %v3059_v51  ;;  %2226 = vmatpush3.msra.mxu1 %v3061_v47 }
  0xd6   :  { %2193 = vmatpush3.msra.mxu0 %v3065_v29  ;;  %2227 = vmatprep.subr.mxu1 %v3067_v44 }
  0xd7   :  { %2194 = vmatprep.subr.mxu0 %v3071_v39  ;;  %2228 = vmatpush3.msra.mxu1 %v3073_v28 }
  0xd8   :  { %2195 = vmatpush3.msra.mxu0 %v3077_v43  ;;  %2229 = vmatprep.subr.mxu1 %v3079_v5 }
  0xd9   :  { %2196 = vmatprep.subr.mxu0 %v3083_v24  ;;  %2230 = vmatpush3.msra.mxu1 %v3085_v6 }
  0xda   :  { %2197 = vmatpush3.msra.mxu0 %v3089_v0  ;;  %2231 = vmatprep.subr.mxu1 %v3091_v59 }
  0xdb   :  { %2198 = vmatprep.subr.mxu0 %v3095_v63  ;;  %2232 = vmatpush3.msra.mxu1 %v3097_v8 }
  0xdc   :  { %2199 = vmatpush3.msra.mxu0 %v3101_v7  ;;  %2233 = vmatprep.subr.mxu1 %v3103_v62 }
  0xdd   :  { %2200 = vmatprep.subr.mxu0 %v3107_v50  ;;  %2234 = vmatpush3.msra.mxu1 %v3109_v42 }
  0xde   :  { %2201 = vmatpush3.msra.mxu0 %v3113_v48  ;;  %2235 = vmatprep.subr.mxu1 %v3115_v37 }
  0xdf   :  { %2202 = vmatprep.subr.mxu0 %v3123_v49  ;;  %2236 = vmatpush3.msra.mxu1 %v3125_v36 }
  0xe0   :  { %2203 = vmatpush3.msra.mxu0 %v3129_v38  ;;  %2237 = vmatprep.subr.mxu1 %v3131_v45 }
  0xe1   :  { %2204 = vmatprep.subr.mxu0 %v3135_v20  ;;  %2238 = vmatpush3.msra.mxu1 %v3137_v19 }
  0xe2   :  { %2205 = vmatpush3.msra.mxu0 %v3141_v22  ;;  %2239 = vmatprep.subr.mxu1 %v3143_v21  ;;  %v3901_v22 = vmov 0.0   ;;  %v3172_v21 = vld [vmem:[%s3799_s6 + $0x18] sm:$0xff] }
  0xe3   :  { %2240 = vmatpush3.msra.mxu1 %v3147_v11  ;;  %v3167_v11 = vld [vmem:[%s3799_s6 + $0x8] sm:$0xff]  ;;  %3903 = vst [vmem:[#allocation52_spill] sm:$0xff] %v3172_v21 }
  0xe4   :  { %3902 = vst [vmem:[#allocation51_spill] sm:$0xff] %v3167_v11  ;;  %841 = vmatprep.subr.mxu0 %v3167_v11  ;;  %912 = vmatprep.subr.mxu1 %v3172_v21 }
 0x182   :  { %v3150_v38 = vpop.f32.mrf.mxu0 }
 0x183   :  { %3897 = vst [vmem:[#allocation47_spill] sm:$0xff] %v3150_v38  ;;  %v3152_v45 = vpop.f32.mrf.mxu1 }
 0x184   :  { %3898 = vst [vmem:[#allocation48_spill] sm:$0xff] %v3152_v45  ;;  %v3154_v49 = vpop.f32.mrf.mxu0 }
 0x185   :  { %3899 = vst [vmem:[#allocation49_spill] sm:$0xff] %v3154_v49  ;;  %v3156_v20 = vpop.f32.mrf.mxu1  ;;  %731 = vmatprep.mubr.f32.mxu0 %v3154_v49 }
 0x186   :  { %3900 = vst [vmem:[#allocation50_spill] sm:$0xff] %v3156_v20  ;;  %732 = vmatmul.mubr.f32.vlgmr.msra.gmra.mxu0 %v3150_v38  ;;  %801 = vmatprep.mubr.f32.mxu1 %v3156_v20  ;;  %v3178_v20 = vld [vmem:[%s3799_s6] sm:$0xff] }
 0x187   :  { %802 = vmatmul.mubr.f32.vlgmr.msra.gmra.mxu1 %v3152_v45  ;;  %875 = vmatprep.mubr.f32.mxu0 %v3901_v22 }
 0x188   :  { %946 = vmatprep.mubr.f32.mxu1 %v3901_v22  ;;  %v3184_v22 = vld [vmem:[%s3799_s6 + $0x10] sm:$0xff]  ;;  %842 = vmatpush1.msra.mxu0 %v3178_v20 }
 0x189   :  { %913 = vmatpush1.msra.mxu1 %v3184_v22  ;;  %2244 = vmatprep.subr.mxu0 %v2956_v16 }
 0x18a   :  { %2279 = vmatprep.subr.mxu1 %v2960_v2 }
 0x246   :  { %v2206_v49 = vpop.f32.mrf.mxu0 }
 0x247   :  { %v2241_v45 = vpop.f32.mrf.mxu1 }
 0x248   :  { %v2207_v38 = vpop.f32.mrf.mxu0 }
 0x249   :  { %v2208_v11 = vadd.f32 %v2207_v38, %v2206_v49  ;;  %v2242_v19 = vpop.f32.mrf.mxu1  ;;  %v3909_v38 = vld [vmem:[#allocation42_spill] sm:$0xff] }
 0x24a   :  { %v2243_v36 = vadd.f32 %v2242_v19, %v2241_v45  ;;  %v3906_v19 = vld [vmem:[#allocation41_spill] sm:$0xff]  ;;  %v3912_v49 = vld [vmem:[#allocation46_spill] sm:$0xff] }
 0x24b   :  { %v3910_v45 = vld [vmem:[#allocation45_spill] sm:$0xff] }
 0x24c   :  { %v804_v21 = vadd.f32 %v2243_v36, %v2208_v11  ;;  %v3905_v11 = vld [vmem:[#allocation38_spill] sm:$0xff]  ;;  %v3908_v36 = vld [vmem:[#allocation43_spill] sm:$0xff] }
 0x24e   :  { %2162 = vmatmul.mubr.msk.f32.vlgmr.msra.gmra.mxu0 %vm807_vm10, %v804_v21  ;;  %2163 = vmatmul.mubr.msk.f32.vlgmr.msra.gmra.mxu1 %vm807_vm10, %v804_v21  ;;  %v3907_v21 = vld [vmem:[#allocation40_spill] sm:$0xff] }
 0x24f   :  { %2245 = vmatpush3.msra.mxu0 %v2958_v18  ;;  %2280 = vmatpush3.msra.mxu1 %v2965_v26 }
 0x250   :  { %2246 = vmatprep.subr.mxu0 %v2963_v25  ;;  %2281 = vmatprep.subr.mxu1 %v2971_v30 }
 0x251   :  { %2247 = vmatpush3.msra.mxu0 %v2969_v27  ;;  %2282 = vmatpush3.msra.mxu1 %v2977_v31 }
 0x252   :  { %2248 = vmatprep.subr.mxu0 %v2975_v3  ;;  %2283 = vmatprep.subr.mxu1 %v2983_v35 }
 0x253   :  { %2249 = vmatpush3.msra.mxu0 %v2981_v33  ;;  %2284 = vmatpush3.msra.mxu1 %v2989_v10 }
 0x254   :  { %2250 = vmatprep.subr.mxu0 %v2987_v9  ;;  %2285 = vmatprep.subr.mxu1 %v2995_v46 }
 0x255   :  { %2251 = vmatpush3.msra.mxu0 %v2993_v40  ;;  %2286 = vmatpush3.msra.mxu1 %v3001_v53 }
 0x256   :  { %2252 = vmatprep.subr.mxu0 %v2999_v52  ;;  %2287 = vmatprep.subr.mxu1 %v3007_v56 }
 0x257   :  { %2253 = vmatpush3.msra.mxu0 %v3005_v55  ;;  %2288 = vmatpush3.msra.mxu1 %v3013_v13 }
 0x258   :  { %2254 = vmatprep.subr.mxu0 %v3011_v57  ;;  %2289 = vmatprep.subr.mxu1 %v3019_v58 }
 0x259   :  { %2255 = vmatpush3.msra.mxu0 %v3017_v54  ;;  %2290 = vmatpush3.msra.mxu1 %v3025_v32  ;;  %v2521_v54 = vld [vmem:[%s3793_s0] sm:$0xff] }
 0x25a   :  { %2256 = vmatprep.subr.mxu0 %v3023_v14  ;;  %2291 = vmatprep.subr.mxu1 %v3031_v60  ;;  %v2522_v14 = vld [vmem:[%s3793_s0 + $0x8] sm:$0xff] }
 0x25b   :  { %2257 = vmatpush3.msra.mxu0 %v3029_v1  ;;  %2292 = vmatpush3.msra.mxu1 %v3037_v61 }
 0x25c   :  { %2258 = vmatprep.subr.mxu0 %v3035_v17  ;;  %2293 = vmatprep.subr.mxu1 %v3043_v4  ;;  %v3904_v4 = vld [vmem:[#allocation39_spill] sm:$0xff] }
 0x25d   :  { %2259 = vmatpush3.msra.mxu0 %v3041_v15  ;;  %2294 = vmatpush3.msra.mxu1 %v3049_v23 }
 0x25e   :  { %2260 = vmatprep.subr.mxu0 %v3047_v41  ;;  %2295 = vmatprep.subr.mxu1 %v3055_v34 }
 0x25f   :  { %2261 = vmatpush3.msra.mxu0 %v3053_v12  ;;  %2296 = vmatpush3.msra.mxu1 %v3061_v47  ;;  %v3919_v47 = vmov 0.0  }
 0x260   :  { %2262 = vmatprep.subr.mxu0 %v3059_v51  ;;  %2297 = vmatprep.subr.mxu1 %v3067_v44 }
 0x261   :  { %2263 = vmatpush3.msra.mxu0 %v3065_v29  ;;  %2298 = vmatpush3.msra.mxu1 %v3073_v28  ;;  %v3918_v28 = vld [vmem:[#allocation50_spill] sm:$0xff] }
 0x262   :  { %2264 = vmatprep.subr.mxu0 %v3071_v39  ;;  %2299 = vmatprep.subr.mxu1 %v3079_v5 }
 0x263   :  { %2265 = vmatpush3.msra.mxu0 %v3077_v43  ;;  %2300 = vmatpush3.msra.mxu1 %v3085_v6  ;;  %v3917_v6 = vld [vmem:[#allocation49_spill] sm:$0xff] }
 0x264   :  { %2266 = vmatprep.subr.mxu0 %v3083_v24  ;;  %2301 = vmatprep.subr.mxu1 %v3091_v59 }
 0x265   :  { %2267 = vmatpush3.msra.mxu0 %v3089_v0  ;;  %2302 = vmatpush3.msra.mxu1 %v3097_v8  ;;  %v3916_v8 = vld [vmem:[#allocation48_spill] sm:$0xff] }
 0x266   :  { %2268 = vmatprep.subr.mxu0 %v3095_v63  ;;  %2303 = vmatprep.subr.mxu1 %v3103_v62  ;;  %v3915_v63 = vld [vmem:[#allocation47_spill] sm:$0xff] }
 0x267   :  { %2269 = vmatpush3.msra.mxu0 %v3101_v7  ;;  %2304 = vmatpush3.msra.mxu1 %v3109_v42  ;;  %v3911_v42 = vld [vmem:[#allocation44_spill] sm:$0xff] }
 0x268   :  { %2270 = vmatprep.subr.mxu0 %v3107_v50  ;;  %2305 = vmatprep.subr.mxu1 %v3115_v37  ;;  %v3913_v37 = vld [vmem:[#allocation51_spill] sm:$0xff] }
 0x269   :  { %2271 = vmatpush3.msra.mxu0 %v3113_v48  ;;  %2306 = vmatpush3.msra.mxu1 %v3904_v4  ;;  %v3914_v48 = vld [vmem:[#allocation52_spill] sm:$0xff] }
 0x26a   :  { %2272 = vmatprep.subr.mxu0 %v3905_v11  ;;  %2307 = vmatprep.subr.mxu1 %v3906_v19 }
 0x26b   :  { %2273 = vmatpush3.msra.mxu0 %v3907_v21  ;;  %2308 = vmatpush3.msra.mxu1 %v3908_v36  ;;  %v1660_v21 = vld [vmem:[%s3797_s4 + $0xf8] sm:$0xff] }
 0x26c   :  { %2274 = vmatprep.subr.mxu0 %v3909_v38  ;;  %2309 = vmatprep.subr.mxu1 %v3910_v45 }
 0x26d   :  { %2275 = vmatpush3.msra.mxu0 %v3911_v42  ;;  %2310 = vmatpush3.msra.mxu1 %v3912_v49  ;;  %v3921_v42 = vld [vmem:[#allocation8_spill] sm:$0xff] }
 0x26e   :  { %1135 = vmatprep.subr.mxu0 %v3913_v37  ;;  %1206 = vmatprep.subr.mxu1 %v3914_v48  ;;  %v3922_v48 = vld [vmem:[#allocation9_spill] sm:$0xff] }
 0x30e   :  { %v877_v50 = vpop.f32.mrf.mxu0  ;;  %v948_v62 = vpop.f32.mrf.mxu1 }
 0x30f   :  { %v953_v7 = vsub.f32 %v3915_v63, %v877_v50  ;;  %v955_v59 = vsub.f32 %v3916_v8, %v948_v62 }
 0x310   :  { %v879_v0 = vpop.f32.mrf.mxu0  ;;  %v950_v5 = vpop.f32.mrf.mxu1 }
 0x311   :  { %v954_v24 = vsub.f32 %v3917_v6, %v879_v0  ;;  %v956_v29 = vsub.f32 %v3918_v28, %v950_v5  ;;  %v957_v43 = vmul.f32 %v953_v7, %v953_v7  ;;  %v959_v44 = vmul.f32 %v955_v59, %v955_v59 }
 0x313   :  { %v958_v34 = vmul.f32 %v954_v24, %v954_v24  ;;  %v960_v39 = vmul.f32 %v956_v29, %v956_v29 }
 0x315   :  { %1025 = vmatprep.mubr.f32.mxu0 %v958_v34  ;;  %1095 = vmatprep.mubr.f32.mxu1 %v960_v39 }
 0x316   :  { %1026 = vmatmul.mubr.f32.vlgmr.msra.gmra.mxu0 %v957_v43  ;;  %1096 = vmatmul.mubr.f32.vlgmr.msra.gmra.mxu1 %v959_v44 }
 0x317   :  { %1136 = vmatpush1.msra.mxu0 %v3178_v20  ;;  %1169 = vmatprep.mubr.f32.mxu0 %v3919_v47 }
 0x318   :  { %1207 = vmatpush1.msra.mxu1 %v3184_v22  ;;  %1240 = vmatprep.mubr.f32.mxu1 %v3919_v47 }
 0x3d6   :  { %v2276_v51 = vpop.f32.mrf.mxu0  ;;  %v2311_v23 = vpop.f32.mrf.mxu1 }
 0x3d8   :  { %v2277_v12 = vpop.f32.mrf.mxu0  ;;  %v2312_v41 = vpop.f32.mrf.mxu1 }
 0x3d9   :  { %v2278_v16 = vadd.f32 %v2277_v12, %v2276_v51  ;;  %v2313_v2 = vadd.f32 %v2312_v41, %v2311_v23  ;;  %v3925_v12 = vld [vmem:[#allocation14_spill] sm:$0xff] }
 0x3db   :  { %v1028_v18 = vadd.f32 1e-05, %v2278_v16 }
 0x3dd   :  { %v1098_v25 = vadd.f32 %v2313_v2, %v1028_v18  ;;  %v3926_v18 = vld [vmem:[#allocation12_spill] sm:$0xff] }
 0x3df   :  { %2517 = vrsqrt.f32 %v1098_v25  ;;  %v3927_v25 = vld [vmem:[#allocation10_spill] sm:$0xff] }
 0x3ec   :  { %v2518_v26 = vpop.eup %2517 }
 0x3ed   :  { %2164 = vmatmul.mubr.msk.f32.vlgmr.msra.gmra.mxu0 %vm807_vm10, %v2518_v26  ;;  %2165 = vmatmul.mubr.msk.f32.vlgmr.msra.gmra.mxu1 %vm807_vm10, %v2518_v26 }
 0x3ee   :  { %1551 = vmatprep.mubr.f32.mxu0 %v3919_v47  ;;  %1622 = vmatprep.mubr.f32.mxu1 %v3919_v47 }
 0x4ad   :  { %v1171_v20 = vpop.f32.mrf.mxu0  ;;  %v1242_v22 = vpop.f32.mrf.mxu1 }
 0x4ae   :  { %v1247_v27 = vmul.f32 %v1171_v20, %v953_v7  ;;  %v1249_v30 = vmul.f32 %v1242_v22, %v955_v59  ;;  %v3923_v7 = vld [vmem:[#allocation6_spill] sm:$0xff]  ;;  %v3924_v59 = vld [vmem:[#allocation7_spill] sm:$0xff]  ;;  %v3928_v20 = vld [vmem:[#allocation16_spill] sm:$0xff] }
 0x4af   :  { %v1173_v3 = vpop.f32.mrf.mxu0  ;;  %v1244_v31 = vpop.f32.mrf.mxu1 }
 0x4b0   :  { %v1255_v33 = vmul.f32 0.01, %v1247_v27  ;;  %v1257_v35 = vmul.f32 0.01, %v1249_v30  ;;  %v1248_v9 = vmul.f32 %v1173_v3, %v954_v24  ;;  %v1250_v10 = vmul.f32 %v1244_v31, %v956_v29  ;;  %v3929_v3 = vld [vmem:[#allocation11_spill] sm:$0xff] }
 0x4b1   :  { %vm1251_vm11 = vcmp.ge.f32.partialorder %v1247_v27, 0.0  ;;  %vm1253_vm12 = vcmp.ge.f32.partialorder %v1249_v30, 0.0 }
 0x4b2   :  { %vm1252_vm13 = vcmp.ge.f32.partialorder %v1248_v9, 0.0  ;;  %v1256_v40 = vmul.f32 0.01, %v1248_v9  ;;  %vm1254_vm14 = vcmp.ge.f32.partialorder %v1250_v10, 0.0  ;;  %v1258_v46 = vmul.f32 0.01, %v1250_v10 }
 0x4b3   :  { %v1259_v52 = vsel %vm1251_vm11, %v1247_v27, %v1255_v33  ;;  %v1261_v53 = vsel %vm1253_vm12, %v1249_v30, %v1257_v35  ;;  %v3930_v33 = vld [vmem:[#allocation15_spill] sm:$0xff] }
 0x4b4   :  { %v1260_v55 = vsel %vm1252_vm13, %v1248_v9, %v1256_v40  ;;  %v1262_v56 = vsel %vm1254_vm14, %v1250_v10, %v1258_v46  ;;  %v3931_v10 = vld [vmem:[#allocation13_spill] sm:$0xff] }
 0x4b5   :  { %v1267_v57 = vcombine.low %v1259_v52, %v1260_v55  ;;  %v1268_v13 = vcombine.low %v1261_v53, %v1262_v56  ;;  %v3932_v53 = vld [vmem:[#allocation17_spill] sm:$0xff]  ;;  %v3933_v56 = vld [vmem:[#allocation18_spill] sm:$0xff] }
 0x4b7   :  { %v3271_v58 = vadd.f32 %v2521_v54, %v1267_v57  ;;  %v3276_v32 = vadd.f32 %v2522_v14, %v1268_v13 }
 0x4b9   :  { %1376 = vrot.lane.b32.xlu0 %v3271_v58, %s2548_s20  ;;  %v3282_v1 = vcombine.high %v3271_v58, %v3271_v58  ;;  %v3290_v60 = vcombine.high %v3276_v32, %v3276_v32 }
 0x4bb   :  { %1378 = vrot.lane.b32.xlu1 %v3282_v1, %s2548_s20 }
 0x4bd   :  { %1380 = vrot.lane.b32.xlu0 %v3276_v32, %s2548_s20 }
 0x4bf   :  { %1382 = vrot.lane.b32.xlu1 %v3290_v60, %s2548_s20 }
 0x4c1   :  { %1392 = vrot.lane.b32.xlu0 %v3271_v58, %s2549_s5 }
 0x4c3   :  { %1394 = vrot.lane.b32.xlu1 %v3282_v1, %s2549_s5 }
 0x4c5   :  { %1396 = vrot.lane.b32.xlu0 %v3276_v32, %s2549_s5 }
 0x4c7   :  { %1398 = vrot.lane.b32.xlu1 %v3290_v60, %s2549_s5 }
 0x4c9   :  { %1344 = vrot.lane.b32.xlu0 %v3271_v58, %s2550_s21 }
 0x4cb   :  { %1346 = vrot.lane.b32.xlu1 %v3282_v1, %s2550_s21 }
 0x4cd   :  { %1348 = vrot.lane.b32.xlu0 %v3276_v32, %s2550_s21 }
 0x4cf   :  { %1350 = vrot.lane.b32.xlu1 %v3290_v60, %s2550_s21 }
 0x4d1   :  { %1360 = vrot.lane.b32.xlu0 %v3271_v58, %s2551_s22 }
 0x4d3   :  { %1362 = vrot.lane.b32.xlu1 %v3282_v1, %s2551_s22 }
 0x4d5   :  { %1364 = vrot.lane.b32.xlu0 %v3276_v32, %s2551_s22 }
 0x4d7   :  { %1366 = vrot.lane.b32.xlu1 %v3290_v60, %s2551_s22 }
 0x4d9   :  { %1328 = vrot.lane.b32.xlu0 %v3271_v58, %s2552_s23 }
 0x4db   :  { %1330 = vrot.lane.b32.xlu1 %v3282_v1, %s2552_s23 }
 0x4dd   :  { %1332 = vrot.lane.b32.xlu0 %v3276_v32, %s2552_s23 }
 0x4df   :  { %1334 = vrot.lane.b32.xlu1 %v3290_v60, %s2552_s23 }
 0x4e1   :  { %1296 = vrot.lane.b32.xlu0 %v3271_v58, %s2553_s24 }
 0x4e3   :  { %1298 = vrot.lane.b32.xlu1 %v3282_v1, %s2553_s24 }
 0x4e5   :  { %1300 = vrot.lane.b32.xlu0 %v3276_v32, %s2553_s24 }
 0x4e7   :  { %1302 = vrot.lane.b32.xlu1 %v3290_v60, %s2553_s24 }
 0x4e9   :  { %1312 = vrot.lane.b32.xlu0 %v3271_v58, %s2554_s25 }
 0x4eb   :  { %1314 = vrot.lane.b32.xlu1 %v3282_v1, %s2554_s25 }
 0x4ed   :  { %1316 = vrot.lane.b32.xlu0 %v3276_v32, %s2554_s25 }
 0x4ef   :  { %1318 = vrot.lane.b32.xlu1 %v3290_v60, %s2554_s25 }
 0x4f1   :  { %1280 = vrot.lane.b32.xlu0 %v3271_v58, %s2556_s26 }
 0x4f3   :  { %1282 = vrot.lane.b32.xlu1 %v3282_v1, %s2556_s26 }
 0x4f5   :  { %1284 = vrot.lane.b32.xlu0 %v3276_v32, %s2556_s26 }
 0x4f7   :  { %1286 = vrot.lane.b32.xlu1 %v3290_v60, %s2556_s26 }
 0x52b   :  { %v1377_v17 = vpop.permute.xlu0 %1376 }
 0x52d   :  { %v1379_v61 = vpop.permute.xlu1 %1378 }
 0x52e   :  { %v1386_v28 = vsel %vm304_vm2, %v1377_v17, %v1379_v61 }
 0x52f   :  { %v1381_v15 = vpop.permute.xlu0 %1380  ;;  %v1388_v41 = vmul.f32 %v1386_v28, %v3925_v12 }
 0x530   :  { %v1385_v34 = vsel %vm304_vm2, %v1379_v61, %v1381_v15  ;;  %v3934_v61 = vld [vmem:[#allocation20_spill] sm:$0xff] }
 0x531   :  { %v1383_v4 = vpop.permute.xlu1 %1382  ;;  %v1389_v2 = vmul.f32 %v1385_v34, %v3926_v18  ;;  %v1448_v52 = vrot.slane %v1388_v41, 4  ;;  %v3938_v18 = vld [vmem:[#allocation23_spill] sm:$0xff] }
 0x532   :  { %v1384_v39 = vsel %vm304_vm2, %v1381_v15, %v1383_v4  ;;  %v1387_v44 = vsel %vm304_vm2, %v1383_v4, %v1377_v17 }
 0x533   :  { %v1393_v11 = vpop.permute.xlu0 %1392  ;;  %v1390_v26 = vmul.f32 %v1384_v39, %v3927_v25  ;;  %v1391_v31 = vmul.f32 %v1387_v44, %v3929_v3  ;;  %v1449_v54 = vrot.slane %v1389_v2, 4 }
 0x535   :  { %v1395_v19 = vpop.permute.xlu1 %1394  ;;  %v1450_v14 = vrot.slane %v1390_v26, 4 }
 0x536   :  { %v1402_v36 = vsel %vm344_vm0, %v1393_v11, %v1395_v19 }
 0x537   :  { %v1397_v38 = vpop.permute.xlu0 %1396  ;;  %v1404_v50 = vmul.f32 %v1402_v36, %v3922_v48 }
 0x538   :  { %v1401_v45 = vsel %vm344_vm0, %v1395_v19, %v1397_v38 }
 0x539   :  { %v1405_v49 = vmul.f32 %v1401_v45, %v3921_v42  ;;  %v1399_v37 = vpop.permute.xlu1 %1398  ;;  %v3935_v42 = vld [vmem:[#allocation21_spill] sm:$0xff] }
 0x53a   :  { %v1400_v62 = vsel %vm344_vm0, %v1397_v38, %v1399_v37  ;;  %v1403_v63 = vsel %vm344_vm0, %v1399_v37, %v1393_v11  ;;  %v1451_v11 = vrot.slane %v1391_v31, 4  ;;  %v3936_v37 = vld [vmem:[#allocation19_spill] sm:$0xff]  ;;  %v3941_v31 = vld [vmem:[#allocation24_spill] sm:$0xff] }
 0x53b   :  { %v1406_v8 = vmul.f32 %v1400_v62, %v3923_v7  ;;  %v1407_v0 = vmul.f32 %v1403_v63, %v3924_v59  ;;  %v1345_v5 = vpop.permute.xlu0 %1344  ;;  %2166 = vmatprep.subr.msk.mxu0 %vm424_vm1, %v1405_v49 }
 0x53c   :  { %2167 = vmatpush1.msk.msra.mxu0 %vm424_vm1, %v1404_v50 }
 0x53d   :  { %2169 = vmatprep.subr.msk.mxu1 %vm424_vm1, %v1407_v0  ;;  %v1347_v6 = vpop.permute.xlu1 %1346 }
 0x53e   :  { %2170 = vmatpush1.msk.msra.mxu1 %vm424_vm1, %v1406_v8  ;;  %v1354_v51 = vsel %vm224_vm3, %v1345_v5, %v1347_v6 }
 0x53f   :  { %v1349_v24 = vpop.permute.xlu0 %1348  ;;  %v1356_v35 = vmul.f32 %v1354_v51, %v3930_v33 }
 0x540   :  { %v1353_v43 = vsel %vm224_vm3, %v1347_v6, %v1349_v24 }
 0x541   :  { %v1351_v29 = vpop.permute.xlu1 %1350  ;;  %v1357_v22 = vmul.f32 %v1353_v43, %v3928_v20  ;;  %v1436_v19 = vrot.slane %v1356_v35, 4  ;;  %v3939_v20 = vld [vmem:[#allocation25_spill] sm:$0xff] }
 0x542   :  { %v1355_v16 = vsel %vm224_vm3, %v1351_v29, %v1345_v5  ;;  %v1352_v27 = vsel %vm224_vm3, %v1349_v24, %v1351_v29 }
 0x543   :  { %v1361_v23 = vpop.permute.xlu0 %1360  ;;  %v1359_v40 = vmul.f32 %v1355_v16, %v3931_v10  ;;  %v1358_v55 = vmul.f32 %v1352_v27, %v3932_v53  ;;  %v1437_v17 = vrot.slane %v1357_v22, 4  ;;  %v1464_v6 = vsel %vm424_vm1, %v3271_v58, %v1436_v19  ;;  %v3937_v58 = vld [vmem:[#allocation22_spill] sm:$0xff] }
 0x544   :  { %v3940_v27 = vld [vmem:[#allocation26_spill] sm:$0xff] }
 0x545   :  { %v1363_v30 = vpop.permute.xlu1 %1362  ;;  %v1439_v45 = vrot.slane %v1359_v40, 4  ;;  %v1438_v63 = vrot.slane %v1358_v55, 4  ;;  %v1465_v59 = vsel %vm424_vm1, %v3282_v1, %v1437_v17 }
 0x546   :  { %v1370_v9 = vsel %vm264_vm4, %v1361_v23, %v1363_v30 }
 0x547   :  { %v1365_v46 = vpop.permute.xlu0 %1364  ;;  %v1372_v57 = vmul.f32 %v1370_v9, %v3933_v56  ;;  %v1467_v28 = vsel %vm424_vm1, %v3290_v60, %v1439_v45  ;;  %v1466_v29 = vsel %vm424_vm1, %v3276_v32, %v1438_v63 }
 0x548   :  { %v1369_v13 = vsel %vm264_vm4, %v1363_v30, %v1365_v46 }
 0x549   :  { %v1373_v15 = vmul.f32 %v1369_v13, %v3934_v61  ;;  %v1367_v4 = vpop.permute.xlu1 %1366  ;;  %v1468_v7 = vsel %vm424_vm1, %v1372_v57, %v1448_v52  ;;  %v3942_v52 = vld [vmem:[#allocation31_spill] sm:$0xff]  ;;  %v3945_v61 = vld [vmem:[#allocation32_spill] sm:$0xff] }
 0x54a   :  { %v1368_v36 = vsel %vm264_vm4, %v1365_v46, %v1367_v4  ;;  %v1371_v38 = vsel %vm264_vm4, %v1367_v4, %v1361_v23  ;;  %v3943_v13 = vld [vmem:[#allocation27_spill] sm:$0xff] }
 0x54b   :  { %v1374_v49 = vmul.f32 %v1368_v36, %v3935_v42  ;;  %v1375_v48 = vmul.f32 %v1371_v38, %v3936_v37  ;;  %v1329_v50 = vpop.permute.xlu0 %1328  ;;  %v1469_v62 = vsel %vm424_vm1, %v1373_v15, %v1449_v54 }
 0x54c   :  { %1511 = vmatprep.subr.mxu0 %v1469_v62  ;;  %v3946_v62 = vld [vmem:[#allocation28_spill] sm:$0xff] }
 0x54d   :  { %1512 = vmatpush1.msra.mxu0 %v1468_v7  ;;  %v1331_v8 = vpop.permute.xlu1 %1330  ;;  %v1471_v0 = vsel %vm424_vm1, %v1375_v48, %v1451_v11  ;;  %v1470_v5 = vsel %vm424_vm1, %v1374_v49, %v1450_v14  ;;  %v3944_v14 = vld [vmem:[#allocation30_spill] sm:$0xff]  ;;  %v3947_v7 = vld [vmem:[#allocation33_spill] sm:$0xff] }
 0x54e   :  { %1513 = vmatprep.subr.mxu0 %v1465_v59  ;;  %1582 = vmatprep.subr.mxu1 %v1471_v0  ;;  %v1338_v44 = vsel %vm184_vm5, %v1329_v50, %v1331_v8  ;;  %v3948_v59 = vld [vmem:[#allocation34_spill] sm:$0xff] }
 0x54f   :  { %v1333_v24 = vpop.permute.xlu0 %1332  ;;  %1514 = vmatpush1.msra.mxu0 %v1464_v6  ;;  %1583 = vmatpush1.msra.mxu1 %v1470_v5  ;;  %v1341_v23 = vmul.f32 %v1338_v44, %v3937_v58  ;;  %v3949_v6 = vld [vmem:[#allocation29_spill] sm:$0xff] }
 0x550   :  { %1584 = vmatprep.subr.mxu1 %v1467_v28  ;;  %v1337_v32 = vsel %vm184_vm5, %v1331_v8, %v1333_v24 }
 0x551   :  { %1585 = vmatpush1.msra.mxu1 %v1466_v29  ;;  %v1335_v1 = vpop.permute.xlu1 %1334  ;;  %v1425_v26 = vrot.slane %v1341_v23, 4  ;;  %v1342_v33 = vmul.f32 %v1337_v32, %v3941_v31  ;;  %v3951_v23 = vld [vmem:[#allocation35_spill] sm:$0xff]  ;;  %v1658_v31 = vld [vmem:[%s3797_s4 + $0xe8] sm:$0xff] }
 0x552   :  { %v1339_v12 = vsel %vm184_vm5, %v1335_v1, %v1329_v50  ;;  %v1336_v60 = vsel %vm184_vm5, %v1333_v24, %v1335_v1 }
 0x553   :  { %v1297_v34 = vpop.permute.xlu0 %1296  ;;  %v1340_v2 = vmul.f32 %v1339_v12, %v3938_v18  ;;  %v1343_v22 = vmul.f32 %v1336_v60, %v3939_v20  ;;  %v1426_v11 = vrot.slane %v1342_v33, 4  ;;  %v1692_v20 = vld [vmem:[%s3797_s4 + $0x1f8] sm:$0xff]  ;;  %v1675_v33 = vld [vmem:[%s3797_s4 + $0x170] sm:$0xff] }
 0x555   :  { %v1299_v39 = vpop.permute.xlu1 %1298  ;;  %v1424_v46 = vrot.slane %v1340_v2, 4  ;;  %v1427_v57 = vrot.slane %v1343_v22, 4  ;;  %v1659_v22 = vld [vmem:[%s3797_s4 + $0xf0] sm:$0xff] }
 0x556   :  { %v1306_v35 = vsel %vm104_vm6, %v1297_v34, %v1299_v39 }
 0x557   :  { %v1301_v43 = vpop.permute.xlu0 %1300  ;;  %v1309_v54 = vmul.f32 %v1306_v35, %v3943_v13  ;;  %v1642_v35 = vld [vmem:[%s3797_s4 + $0x68] sm:$0xff]  ;;  %v1655_v13 = vld [vmem:[%s3797_s4 + $0xd0] sm:$0xff] }
 0x558   :  { %v1305_v38 = vsel %vm104_vm6, %v1299_v39, %v1301_v43 }
 0x559   :  { %v1303_v51 = vpop.permute.xlu1 %1302  ;;  %v1413_v50 = vrot.slane %v1309_v54, 4  ;;  %v1310_v24 = vmul.f32 %v1305_v38, %v3949_v6  ;;  %v1672_v54 = vld [vmem:[%s3797_s4 + $0x158] sm:$0xff]  ;;  %v1637_v38 = vld [vmem:[%s3797_s4 + $0x40] sm:$0xff] }
 0x55a   :  { %v1304_v19 = vsel %vm104_vm6, %v1301_v43, %v1303_v51  ;;  %v1307_v36 = vsel %vm104_vm6, %v1303_v51, %v1297_v34  ;;  %v3950_v34 = vld [vmem:[#allocation36_spill] sm:$0xff]  ;;  %v1649_v6 = vld [vmem:[%s3797_s4 + $0xa0] sm:$0xff] }
 0x55b   :  { %v1313_v41 = vpop.permute.xlu0 %1312  ;;  %v1308_v63 = vmul.f32 %v1307_v36, %v3946_v62  ;;  %v1311_v8 = vmul.f32 %v1304_v19, %v3947_v7  ;;  %v1414_v32 = vrot.slane %v1310_v24, 4  ;;  %v1653_v19 = vld [vmem:[%s3797_s4 + $0xc0] sm:$0xff]  ;;  %v1670_v36 = vld [vmem:[%s3797_s4 + $0x148] sm:$0xff]  ;;  %v1668_v62 = vld [vmem:[%s3797_s4 + $0x138] sm:$0xff] }
 0x55c   :  { %v1683_v7 = vld [vmem:[%s3797_s4 + $0x1b0] sm:$0xff]  ;;  %v1666_v24 = vld [vmem:[%s3797_s4 + $0x128] sm:$0xff] }
 0x55d   :  { %v1315_v16 = vpop.permute.xlu1 %1314  ;;  %v1412_v51 = vrot.slane %v1308_v63, 4  ;;  %v1415_v58 = vrot.slane %v1311_v8, 4  ;;  %v1635_v63 = vld [vmem:[%s3797_s4 + $0x30] sm:$0xff]  ;;  %v1650_v8 = vld [vmem:[%s3797_s4 + $0xa8] sm:$0xff] }
 0x55e   :  { %v1322_v25 = vsel %vm144_vm7, %v1313_v41, %v1315_v16 }
 0x55f   :  { %v1325_v30 = vmul.f32 %v1322_v25, %v3940_v27  ;;  %v1317_v3 = vpop.permute.xlu0 %1316  ;;  %v1676_v27 = vld [vmem:[%s3797_s4 + $0x178] sm:$0xff] }
 0x560   :  { %v1321_v9 = vsel %vm144_vm7, %v1315_v16, %v1317_v3  ;;  %v1273_v16 = vld [vmem:[%s3795_s2] sm:$0xff] }
 0x561   :  { %v1319_v10 = vpop.permute.xlu1 %1318  ;;  %v1461_v40 = vsel %vm424_vm1, %v1325_v30, %v1425_v26  ;;  %v1326_v53 = vmul.f32 %v1321_v9, %v3942_v52  ;;  %v1644_v26 = vld [vmem:[%s3797_s4 + $0x78] sm:$0xff]  ;;  %v1643_v30 = vld [vmem:[%s3797_s4 + $0x70] sm:$0xff]  ;;  %v1690_v9 = vld [vmem:[%s3797_s4 + $0x1e8] sm:$0xff] }
 0x562   :  { %v1320_v55 = vsel %vm144_vm7, %v1317_v3, %v1319_v10  ;;  %v1323_v56 = vsel %vm144_vm7, %v1319_v10, %v1313_v41  ;;  %1515 = vmatprep.subr.mxu0 %v1461_v40  ;;  %v3952_v41 = vld [vmem:[#allocation37_spill] sm:$0xff]  ;;  %v1691_v3 = vld [vmem:[%s3797_s4 + $0x1f0] sm:$0xff]  ;;  %v1674_v40 = vld [vmem:[%s3797_s4 + $0x168] sm:$0xff] }
 0x563   :  { %v1324_v17 = vmul.f32 %v1323_v56, %v3944_v14  ;;  %v1327_v15 = vmul.f32 %v1320_v55, %v3945_v61  ;;  %v1281_v4 = vpop.permute.xlu0 %1280  ;;  %v1462_v48 = vsel %vm424_vm1, %v1326_v53, %v1426_v11  ;;  %v1657_v10 = vld [vmem:[%s3797_s4 + $0xe0] sm:$0xff]  ;;  %v1656_v53 = vld [vmem:[%s3797_s4 + $0xd8] sm:$0xff]  ;;  %v1639_v14 = vld [vmem:[%s3797_s4 + $0x50] sm:$0xff] }
 0x564   :  { %v1689_v52 = vld [vmem:[%s3797_s4 + $0x1e0] sm:$0xff]  ;;  %v1640_v56 = vld [vmem:[%s3797_s4 + $0x58] sm:$0xff]  ;;  %v1654_v61 = vld [vmem:[%s3797_s4 + $0xc8] sm:$0xff] }
 0x565   :  { %v1283_v45 = vpop.permute.xlu1 %1282  ;;  %v1460_v42 = vsel %vm424_vm1, %v1324_v17, %v1424_v46  ;;  %v1463_v49 = vsel %vm424_vm1, %v1327_v15, %v1427_v57  ;;  %v1641_v46 = vld [vmem:[%s3797_s4 + $0x60] sm:$0xff]  ;;  %v1688_v57 = vld [vmem:[%s3797_s4 + $0x1d8] sm:$0xff]  ;;  %v1687_v17 = vld [vmem:[%s3797_s4 + $0x1d0] sm:$0xff] }
 0x566   :  { %v1290_v37 = vsel %vm65_vm8, %v1281_v4, %v1283_v45  ;;  %1516 = vmatpush1.msra.mxu0 %v1460_v42  ;;  %1586 = vmatprep.subr.mxu1 %v1463_v49  ;;  %v1673_v55 = vld [vmem:[%s3797_s4 + $0x160] sm:$0xff]  ;;  %v1671_v15 = vld [vmem:[%s3797_s4 + $0x150] sm:$0xff]  ;;  %v1686_v11 = vld [vmem:[%s3797_s4 + $0x1c8] sm:$0xff] }
 0x567   :  { %v1293_v0 = vmul.f32 %v1290_v37, %v3948_v59  ;;  %v1285_v5 = vpop.permute.xlu0 %1284  ;;  %1587 = vmatpush1.msra.mxu1 %v1462_v48  ;;  %v1652_v42 = vld [vmem:[%s3797_s4 + $0xb8] sm:$0xff]  ;;  %v1669_v49 = vld [vmem:[%s3797_s4 + $0x140] sm:$0xff]  ;;  %v1667_v59 = vld [vmem:[%s3797_s4 + $0x130] sm:$0xff] }
 0x568   :  { %v1289_v28 = vsel %vm65_vm8, %v1283_v45, %v1285_v5  ;;  %v1685_v45 = vld [vmem:[%s3797_s4 + $0x1c0] sm:$0xff]  ;;  %v1636_v37 = vld [vmem:[%s3797_s4 + $0x38] sm:$0xff] }
 0x569   :  { %v1287_v29 = vpop.permute.xlu1 %1286  ;;  %v1457_v1 = vsel %vm424_vm1, %v1293_v0, %v1413_v50  ;;  %v1294_v39 = vmul.f32 %v1289_v28, %v3950_v34  ;;  %v1684_v48 = vld [vmem:[%s3797_s4 + $0x1b8] sm:$0xff]  ;;  %v1651_v50 = vld [vmem:[%s3797_s4 + $0xb0] sm:$0xff]  ;;  %v1634_v0 = vld [vmem:[%s3797_s4 + $0x28] sm:$0xff] }
 0x56a   :  { %v1288_v43 = vsel %vm65_vm8, %v1285_v5, %v1287_v29  ;;  %v1291_v44 = vsel %vm65_vm8, %v1287_v29, %v1281_v4  ;;  %1517 = vmatprep.subr.mxu0 %v1457_v1  ;;  %v1638_v4 = vld [vmem:[%s3797_s4 + $0x48] sm:$0xff]  ;;  %v1633_v28 = vld [vmem:[%s3797_s4 + $0x20] sm:$0xff]  ;;  %v1648_v1 = vld [vmem:[%s3797_s4 + $0x98] sm:$0xff] }
 0x56b   :  { %v1292_v12 = vmul.f32 %v1291_v44, %v3951_v23  ;;  %v1295_v60 = vmul.f32 %v1288_v43, %v3952_v41  ;;  %v1458_v25 = vsel %vm424_vm1, %v1294_v39, %v1414_v32  ;;  %v1682_v5 = vld [vmem:[%s3797_s4 + $0x1a8] sm:$0xff]  ;;  %v1681_v29 = vld [vmem:[%s3797_s4 + $0x1a0] sm:$0xff]  ;;  %v1632_v39 = vld [vmem:[%s3797_s4 + $0x18] sm:$0xff] }
 0x56c   :  { %v1665_v34 = vld [vmem:[%s3797_s4 + $0x120] sm:$0xff]  ;;  %v1680_v43 = vld [vmem:[%s3797_s4 + $0x198] sm:$0xff]  ;;  %v1647_v44 = vld [vmem:[%s3797_s4 + $0x90] sm:$0xff] }
 0x56d   :  { %v1456_v18 = vsel %vm424_vm1, %v1292_v12, %v1412_v51  ;;  %v1459_v2 = vsel %vm424_vm1, %v1295_v60, %v1415_v58  ;;  %v1664_v51 = vld [vmem:[%s3797_s4 + $0x118] sm:$0xff]  ;;  %v1631_v58 = vld [vmem:[%s3797_s4 + $0x10] sm:$0xff]  ;;  %v1646_v12 = vld [vmem:[%s3797_s4 + $0x88] sm:$0xff] }
 0x56e   :  { %1518 = vmatpush1.msra.mxu0 %v1456_v18  ;;  %1588 = vmatprep.subr.mxu1 %v1459_v2  ;;  %v1679_v23 = vld [vmem:[%s3797_s4 + $0x190] sm:$0xff]  ;;  %v1630_v60 = vld [vmem:[%s3797_s4 + $0x8] sm:$0xff]  ;;  %v1629_v2 = vld [vmem:[%s3797_s4] sm:$0xff] }
 0x56f   :  { %2168 = vmatmul.mubr.msk.f32.vlgmr.msra.gmra.mxu0 %vm441_vm9, %v1273_v16  ;;  %1589 = vmatpush1.msra.mxu1 %v1458_v25  ;;  %v1663_v41 = vld [vmem:[%s3797_s4 + $0x110] sm:$0xff]  ;;  %v1678_v32 = vld [vmem:[%s3797_s4 + $0x188] sm:$0xff]  ;;  %v1661_v25 = vld [vmem:[%s3797_s4 + $0x100] sm:$0xff] }
 0x570   :  { %2171 = vmatmul.mubr.msk.f32.vlgmr.msra.gmra.mxu1 %vm441_vm9, %v1273_v16  ;;  %2314 = vmatprep.subr.mxu0 %v1660_v21  ;;  %v1645_v16 = vld [vmem:[%s3797_s4 + $0x80] sm:$0xff]  ;;  %v1662_v18 = vld [vmem:[%s3797_s4 + $0x108] sm:$0xff] }
 0x571   :  { %2315 = vmatpush3.msra.mxu0 %v1644_v26  ;;  %2349 = vmatprep.subr.mxu1 %v1692_v20  ;;  %v1677_v21 = vld [vmem:[%s3797_s4 + $0x180] sm:$0xff] }
 0x572   :  { %2316 = vmatprep.subr.mxu0 %v1659_v22  ;;  %2350 = vmatpush3.msra.mxu1 %v1676_v27  ;;  %v3672_v27 = vld [vmem:[%s3800_s7 + $0x78] sm:$0xff] }
 0x573   :  { %2317 = vmatpush3.msra.mxu0 %v1643_v30  ;;  %2351 = vmatprep.subr.mxu1 %v1691_v3  ;;  %v3677_v3 = vld [vmem:[%s3800_s7 + $0x70] sm:$0xff] }
 0x574   :  { %2318 = vmatprep.subr.mxu0 %v1658_v31  ;;  %2352 = vmatpush3.msra.mxu1 %v1675_v33  ;;  %v3684_v31 = vld [vmem:[%s3800_s7 + $0x68] sm:$0xff]  ;;  %v3691_v33 = vld [vmem:[%s3800_s7 + $0x60] sm:$0xff] }
 0x575   :  { %2319 = vmatpush3.msra.mxu0 %v1642_v35  ;;  %2353 = vmatprep.subr.mxu1 %v1690_v9  ;;  %v3698_v35 = vld [vmem:[%s3800_s7 + $0x58] sm:$0xff]  ;;  %v3705_v9 = vld [vmem:[%s3800_s7 + $0x50] sm:$0xff] }
 0x576   :  { %2320 = vmatprep.subr.mxu0 %v1657_v10  ;;  %2354 = vmatpush3.msra.mxu1 %v1674_v40  ;;  %v3712_v10 = vld [vmem:[%s3800_s7 + $0x48] sm:$0xff]  ;;  %v1841_v40 = vld [vmem:[%s3800_s7 + $0x40] sm:$0xff] }
 0x577   :  { %2321 = vmatpush3.msra.mxu0 %v1641_v46  ;;  %2355 = vmatprep.subr.mxu1 %v1689_v52  ;;  %v1840_v46 = vld [vmem:[%s3800_s7 + $0x38] sm:$0xff]  ;;  %v1839_v52 = vld [vmem:[%s3800_s7 + $0x30] sm:$0xff] }
 0x578   :  { %2322 = vmatprep.subr.mxu0 %v1656_v53  ;;  %2356 = vmatpush3.msra.mxu1 %v1673_v55  ;;  %v1838_v53 = vld [vmem:[%s3800_s7 + $0x28] sm:$0xff]  ;;  %v1837_v55 = vld [vmem:[%s3800_s7 + $0x20] sm:$0xff] }
 0x579   :  { %2323 = vmatpush3.msra.mxu0 %v1640_v56  ;;  %2357 = vmatprep.subr.mxu1 %v1688_v57  ;;  %v1836_v56 = vld [vmem:[%s3800_s7 + $0x18] sm:$0xff]  ;;  %v1835_v57 = vld [vmem:[%s3800_s7 + $0x10] sm:$0xff] }
 0x57a   :  { %2324 = vmatprep.subr.mxu0 %v1655_v13  ;;  %2358 = vmatpush3.msra.mxu1 %v1672_v54  ;;  %v1834_v13 = vld [vmem:[%s3800_s7 + $0x8] sm:$0xff]  ;;  %v1833_v54 = vld [vmem:[%s3800_s7] sm:$0xff] }
 0x57b   :  { %2325 = vmatpush3.msra.mxu0 %v1639_v14  ;;  %2359 = vmatprep.subr.mxu1 %v1687_v17  ;;  %v1849_v14 = vld [vmem:[%s3801_s8] sm:$0xff] }
 0x57c   :  { %2326 = vmatprep.subr.mxu0 %v1654_v61  ;;  %2360 = vmatpush3.msra.mxu1 %v1671_v15 }
 0x57d   :  { %2327 = vmatpush3.msra.mxu0 %v1638_v4  ;;  %2361 = vmatprep.subr.mxu1 %v1686_v11 }
 0x57e   :  { %2328 = vmatprep.subr.mxu0 %v1653_v19  ;;  %2362 = vmatpush3.msra.mxu1 %v1670_v36 }
 0x57f   :  { %2329 = vmatpush3.msra.mxu0 %v1637_v38  ;;  %2363 = vmatprep.subr.mxu1 %v1685_v45 }
 0x580   :  { %2330 = vmatprep.subr.mxu0 %v1652_v42  ;;  %2364 = vmatpush3.msra.mxu1 %v1669_v49 }
 0x581   :  { %2331 = vmatpush3.msra.mxu0 %v1636_v37  ;;  %2365 = vmatprep.subr.mxu1 %v1684_v48 }
 0x582   :  { %2332 = vmatprep.subr.mxu0 %v1651_v50  ;;  %2366 = vmatpush3.msra.mxu1 %v1668_v62 }
 0x583   :  { %2333 = vmatpush3.msra.mxu0 %v1635_v63  ;;  %2367 = vmatprep.subr.mxu1 %v1683_v7 }
 0x584   :  { %2334 = vmatprep.subr.mxu0 %v1650_v8  ;;  %2368 = vmatpush3.msra.mxu1 %v1667_v59 }
 0x585   :  { %2335 = vmatpush3.msra.mxu0 %v1634_v0  ;;  %2369 = vmatprep.subr.mxu1 %v1682_v5 }
 0x586   :  { %2336 = vmatprep.subr.mxu0 %v1649_v6  ;;  %2370 = vmatpush3.msra.mxu1 %v1666_v24 }
 0x587   :  { %2337 = vmatpush3.msra.mxu0 %v1633_v28  ;;  %2371 = vmatprep.subr.mxu1 %v1681_v29 }
 0x588   :  { %2338 = vmatprep.subr.mxu0 %v1648_v1  ;;  %2372 = vmatpush3.msra.mxu1 %v1665_v34 }
 0x589   :  { %2339 = vmatpush3.msra.mxu0 %v1632_v39  ;;  %2373 = vmatprep.subr.mxu1 %v1680_v43 }
 0x58a   :  { %2340 = vmatprep.subr.mxu0 %v1647_v44  ;;  %2374 = vmatpush3.msra.mxu1 %v1664_v51 }
 0x58b   :  { %2341 = vmatpush3.msra.mxu0 %v1631_v58  ;;  %2375 = vmatprep.subr.mxu1 %v1679_v23 }
 0x58c   :  { %2342 = vmatprep.subr.mxu0 %v1646_v12  ;;  %2376 = vmatpush3.msra.mxu1 %v1663_v41 }
 0x58d   :  { %2343 = vmatpush3.msra.mxu0 %v1630_v60  ;;  %2377 = vmatprep.subr.mxu1 %v1678_v32 }
 0x58e   :  { %2344 = vmatprep.subr.mxu0 %v1645_v16  ;;  %2378 = vmatpush3.msra.mxu1 %v1662_v18 }
 0x58f   :  { %2345 = vmatpush3.msra.mxu0 %v1629_v2  ;;  %2379 = vmatprep.subr.mxu1 %v1677_v21 }
 0x590   :  { %2380 = vmatpush3.msra.mxu1 %v1661_v25  ;;  %2422 = vmatprep.subr.mxu0 %v3919_v47 }
 0x591   :  { %2457 = vmatprep.subr.mxu1 %v3919_v47 }
 0x62f   :  { %v1553_v26 = vpop.f32.mrf.mxu0 }
 0x630   :  { %v1624_v20 = vpop.f32.mrf.mxu1 }
 0x631   :  { %v1555_v22 = vpop.f32.mrf.mxu0 }
 0x632   :  { %v1626_v30 = vpop.f32.mrf.mxu1  ;;  %1757 = vmatprep.mubr.f32.mxu0 %v1555_v22 }
 0x633   :  { %1758 = vmatmul.mubr.f32.vlgmr.msra.gmra.mxu0 %v1553_v26  ;;  %1827 = vmatprep.mubr.f32.mxu1 %v1626_v30 }
 0x634   :  { %1828 = vmatmul.mubr.f32.vlgmr.msra.gmra.mxu1 %v1624_v20  ;;  %2423 = vmatpush3.msra.mxu0 %v3672_v27 }
 0x635   :  { %2424 = vmatprep.subr.mxu0 %v3919_v47  ;;  %2454 = vmatprep.mubr.msk.f32.mxu0 %vm2557_vm15, %v3919_v47 }
 0x636   :  { %2425 = vmatpush3.msra.mxu0 %v3677_v3  ;;  %2459 = vmatprep.mubr.msk.f32.mxu1 %vm2557_vm15, %v3919_v47 }
 0x637   :  { %2426 = vmatprep.subr.mxu0 %v3919_v47  ;;  %2458 = vmatpush3.msra.mxu1 %v1849_v14 }
 0x638   :  { %2427 = vmatpush3.msra.mxu0 %v3684_v31  ;;  %2462 = vmatprep.subr.mxu1 %v3919_v47 }
 0x639   :  { %2428 = vmatprep.subr.mxu0 %v3919_v47 }
 0x63a   :  { %2429 = vmatpush3.msra.mxu0 %v3691_v33 }
 0x63b   :  { %2430 = vmatprep.subr.mxu0 %v3919_v47 }
 0x63c   :  { %2431 = vmatpush3.msra.mxu0 %v3698_v35 }
 0x63d   :  { %2432 = vmatprep.subr.mxu0 %v3919_v47 }
 0x63e   :  { %2433 = vmatpush3.msra.mxu0 %v3705_v9 }
 0x63f   :  { %2434 = vmatprep.subr.mxu0 %v3919_v47 }
 0x640   :  { %2435 = vmatpush3.msra.mxu0 %v3712_v10 }
 0x641   :  { %2436 = vmatprep.subr.mxu0 %v3919_v47 }
 0x642   :  { %2437 = vmatpush3.msra.mxu0 %v1841_v40 }
 0x643   :  { %2438 = vmatprep.subr.mxu0 %v3919_v47 }
 0x644   :  { %2439 = vmatpush3.msra.mxu0 %v1840_v46 }
 0x645   :  { %2440 = vmatprep.subr.mxu0 %v3919_v47 }
 0x646   :  { %2441 = vmatpush3.msra.mxu0 %v1839_v52 }
 0x647   :  { %2442 = vmatprep.subr.mxu0 %v3919_v47 }
 0x648   :  { %2443 = vmatpush3.msra.mxu0 %v1838_v53 }
 0x649   :  { %2444 = vmatprep.subr.mxu0 %v3919_v47 }
 0x64a   :  { %2445 = vmatpush3.msra.mxu0 %v1837_v55 }
 0x64b   :  { %2446 = vmatprep.subr.mxu0 %v3919_v47 }
 0x64c   :  { %2447 = vmatpush3.msra.mxu0 %v1836_v56 }
 0x64d   :  { %2448 = vmatprep.subr.mxu0 %v3919_v47 }
 0x64e   :  { %2449 = vmatpush3.msra.mxu0 %v1835_v57 }
 0x64f   :  { %2450 = vmatprep.subr.mxu0 %v3919_v47 }
 0x650   :  { %2451 = vmatpush3.msra.mxu0 %v1834_v13 }
 0x651   :  { %2452 = vmatprep.subr.mxu0 %v3919_v47 }
 0x652   :  { %2453 = vmatpush3.msra.mxu0 %v1833_v54 }
 0x653   :  { %2497 = vmatprep.subr.mxu0 %v3919_v47 }
 0x6f3   :  { %v2346_v17 = vpop.f32.mrf.mxu0 }
 0x6f4   :  { %v2381_v61 = vpop.f32.mrf.mxu1 }
 0x6f5   :  { %v2347_v15 = vpop.f32.mrf.mxu0 }
 0x6f6   :  { %v2348_v4 = vadd.f32 %v2347_v15, %v2346_v17  ;;  %v2382_v11 = vpop.f32.mrf.mxu1 }
 0x6f7   :  { %v2383_v19 = vadd.f32 %v2382_v11, %v2381_v61 }
 0x6f9   :  { %v1830_v36 = vadd.f32 %v2383_v19, %v2348_v4 }
 0x6fb   :  { %2455 = vmatmul.mubr.f32.vlgmr.msra.gmra.mxu0 %v1830_v36 }
 0x6fc   :  { %2498 = vmatpush3.msra.mxu0 %v1849_v14  ;;  %2499 = vmatprep.mubr.msk.f32.mxu0 %vm2557_vm15, %v3919_v47 }
 0x7bb   :  { %v1916_v38 = vpop.f32.mrf.mxu0 }
 0x7bc   :  { %2460 = vmatmul.mubr.msk.f32.vlgmr.msra.gmra.mxu1 %vm807_vm10, %v1916_v38 }
 0x7bd   :  { %v2456_v45 = vpop.f32.mrf.mxu0  ;;  %2463 = vmatpush3.msra.mxu1 %v3672_v27  ;;  %2494 = vmatprep.mubr.msk.f32.mxu1 %vm2557_vm15, %v3919_v47 }
 0x7be   :  { %2464 = vmatprep.subr.mxu1 %v3919_v47 }
 0x7bf   :  { %2465 = vmatpush3.msra.mxu1 %v3677_v3 }
 0x7c0   :  { %2466 = vmatprep.subr.mxu1 %v3919_v47 }
 0x7c1   :  { %2467 = vmatpush3.msra.mxu1 %v3684_v31 }
 0x7c2   :  { %2468 = vmatprep.subr.mxu1 %v3919_v47 }
 0x7c3   :  { %2469 = vmatpush3.msra.mxu1 %v3691_v33 }
 0x7c4   :  { %2470 = vmatprep.subr.mxu1 %v3919_v47 }
 0x7c5   :  { %2471 = vmatpush3.msra.mxu1 %v3698_v35 }
 0x7c6   :  { %2472 = vmatprep.subr.mxu1 %v3919_v47 }
 0x7c7   :  { %2473 = vmatpush3.msra.mxu1 %v3705_v9 }
 0x7c8   :  { %2474 = vmatprep.subr.mxu1 %v3919_v47 }
 0x7c9   :  { %2475 = vmatpush3.msra.mxu1 %v3712_v10 }
 0x7ca   :  { %2476 = vmatprep.subr.mxu1 %v3919_v47 }
 0x7cb   :  { %2477 = vmatpush3.msra.mxu1 %v1841_v40 }
 0x7cc   :  { %2478 = vmatprep.subr.mxu1 %v3919_v47 }
 0x7cd   :  { %2479 = vmatpush3.msra.mxu1 %v1840_v46 }
 0x7ce   :  { %2480 = vmatprep.subr.mxu1 %v3919_v47 }
 0x7cf   :  { %2481 = vmatpush3.msra.mxu1 %v1839_v52 }
 0x7d0   :  { %2482 = vmatprep.subr.mxu1 %v3919_v47 }
 0x7d1   :  { %2483 = vmatpush3.msra.mxu1 %v1838_v53 }
 0x7d2   :  { %2484 = vmatprep.subr.mxu1 %v3919_v47 }
 0x7d3   :  { %2485 = vmatpush3.msra.mxu1 %v1837_v55 }
 0x7d4   :  { %2486 = vmatprep.subr.mxu1 %v3919_v47 }
 0x7d5   :  { %2487 = vmatpush3.msra.mxu1 %v1836_v56 }
 0x7d6   :  { %2488 = vmatprep.subr.mxu1 %v3919_v47 }
 0x7d7   :  { %2489 = vmatpush3.msra.mxu1 %v1835_v57 }
 0x7d8   :  { %2490 = vmatprep.subr.mxu1 %v3919_v47 }
 0x7d9   :  { %2491 = vmatpush3.msra.mxu1 %v1834_v13 }
 0x7da   :  { %2492 = vmatprep.subr.mxu1 %v3919_v47 }
 0x7db   :  { %2493 = vmatpush3.msra.mxu1 %v1833_v54 }
 0x87c   :  { %v1989_v42 = vpop.f32.mrf.mxu1 }
 0x87d   :  { %v1993_v49 = vsub.f32 %v1830_v36, %v1989_v42 }
 0x87e   :  { %v2461_v37 = vpop.f32.mrf.mxu1 }
 0x87f   :  { %v1994_v48 = vmul.f32 %v1993_v49, %v1993_v49 }
 0x881   :  { %2495 = vmatmul.mubr.f32.vlgmr.msra.gmra.mxu1 %v1994_v48 }
 0x941   :  { %v2061_v50 = vpop.f32.mrf.mxu1 }
 0x942   :  { %v2062_v62 = vadd.f32 1e-05, %v2061_v50 }
 0x943   :  { %v2496_v63 = vpop.f32.mrf.mxu1 }
 0x944   :  { %2519 = vrsqrt.f32 %v2062_v62 }
 0x951   :  { %v2520_v7 = vpop.eup %2519 }
 0x952   :  { %2500 = vmatmul.mubr.msk.f32.vlgmr.msra.gmra.mxu0 %vm807_vm10, %v2520_v7 }
 0xa12   :  { %v2135_v8 = vpop.f32.mrf.mxu0 }
 0xa13   :  { %v2139_v59 = vmul.f32 %v2135_v8, %v1993_v49 }
 0xa14   :  { %v2501_v0 = vpop.f32.mrf.mxu0 }
 0xa15   :  { %vm2140_vm0 = vcmp.ge.f32.partialorder %v2139_v59, 0.0  ;;  %v2141_v5 = vmul.f32 0.01, %v2139_v59 }
 0xa17   :  { %v2142_v6 = vsel %vm2140_vm0, %v2139_v59, %v2141_v5 }
 0xa18   :  { %2143 = vst [vmem:[%s3802_s9] sm:$0xff] %v2142_v6 }
 0xa19   :  { %2148 = vsyncpa [#allocation3], 1 }

</bundles_post_ra>
